<compile_context>
chip_gen: v7x
topology: tpu7x:2x2x1
jax: 0.10.0
libtpu: 0.0.40
codegen_flags: <defaults>
</compile_context>

<pallas_src>
import numpy as np
import jax
import jax.numpy as jnp
from jax import lax
from jax.experimental import pallas as pl
from jax.experimental.pallas import tpu as pltpu


# ----------------------------------------------------------------------------
# helpers
# ----------------------------------------------------------------------------
def _round_up(n, m):
    return ((n + m - 1) // m) * m


def _pick_tb(B):
    """Batch tile: multiple of 8, >=2 grid steps when B allows (v7x megacore)."""
    if B <= 8:
        return 8
    return min(128, _round_up((B + 1) // 2, 8))


# ----------------------------------------------------------------------------
# fused kernel (one grid step = TB samples)
# ----------------------------------------------------------------------------
def _make_kernel(TB):
    C1W = 160   # conv1/pool1 cols: (wp in 0..9) x (c in 0..15), wp 0/9 are zero pad
    C2W = 128   # pool2 cols: (j3 in 0..3) x (cout in 0..31)

    def kernel(x_ref, w1g_ref, b1p_ref, w2g_ref, b2r_ref,
               wf1_ref, bf1_ref, wf2_ref, bf2_ref, o_ref):
        f32 = jnp.float32

        # input block: (18, TB, 18) = (padded row, sample, padded col)
        xb = x_ref[...].astype(jnp.bfloat16)
        xrow = [xb[p] for p in range(18)]                       # each (TB, 18)

        # conv1 LHS operands; rows ordered (h2, b): L[s][(h2,b),u] = xp[b, s+2*h2, u]
        L = [jnp.concatenate([xrow[s + 2 * h] for h in range(8)], axis=0)
             for s in range(4)]                                 # 4 x (8*TB, 18)

        # conv1 + bias + ReLU + 2x2 max-pool + conv2 W zero-padding, all fused.
        # Branch (hb, pw): conv1 pre-bias output at rows h = 2*h2 + hb with the
        # even/odd-w column selection (pw) and wp in {0,9} zero columns folded
        # into the host-built W1g matrices.
        def c1_branch(hb, pw):
            acc = jnp.dot(L[hb], w1g_ref[0, pw], preferred_element_type=f32)
            acc = acc + jnp.dot(L[hb + 1], w1g_ref[1, pw], preferred_element_type=f32)
            acc = acc + jnp.dot(L[hb + 2], w1g_ref[2, pw], preferred_element_type=f32)
            return acc                                          # (8*TB, 160)

        m1 = jnp.maximum(jnp.maximum(c1_branch(0, 0), c1_branch(0, 1)),
                         jnp.maximum(c1_branch(1, 0), c1_branch(1, 1)))
        pool1 = jnp.maximum(m1 + b1p_ref[...], 0.0)             # (8*TB,160) rows=(h2,b)
        p1b = pool1.astype(jnp.bfloat16)

        # conv2 LHS operands; rows ordered (i3, b), built from contiguous
        # leading-dim row blocks of pool1 (H zero padding = explicit zero blocks).
        zblk = jnp.zeros((TB, C1W), jnp.bfloat16)
        blk = [zblk] + [p1b[i * TB:(i + 1) * TB] for i in range(8)] + [zblk]
        Q = [jnp.concatenate([blk[s + 2 * i] for i in range(4)], axis=0)
             for s in range(4)]                                 # 4 x (4*TB, 160)

        # conv2 + bias + ReLU + 2x2 max-pool (W selection folded into W2g).
        def c2_branch(hb, pw):
            acc = jnp.dot(Q[hb], w2g_ref[0, pw], preferred_element_type=f32)
            acc = acc + jnp.dot(Q[hb + 1], w2g_ref[1, pw], preferred_element_type=f32)
            acc = acc + jnp.dot(Q[hb + 2], w2g_ref[2, pw], preferred_element_type=f32)
            return acc                                          # (4*TB, 128)

        m2 = jnp.maximum(jnp.maximum(c2_branch(0, 0), c2_branch(0, 1)),
                         jnp.maximum(c2_branch(1, 0), c2_branch(1, 1)))
        pool2 = jnp.maximum(m2 + b2r_ref[...], 0.0)             # (4*TB,128) rows=(i3,b)
        p2b = pool2.astype(jnp.bfloat16)

        # FC1: PyTorch (C,H,W)-flatten folded into Wf1blk; 4 accumulated K=128 matmuls.
        acc = jnp.dot(p2b[0:TB], wf1_ref[0], preferred_element_type=f32)
        for i3 in range(1, 4):
            acc = acc + jnp.dot(p2b[i3 * TB:(i3 + 1) * TB], wf1_ref[i3],
                                preferred_element_type=f32)
        h = jnp.maximum(acc + bf1_ref[...], 0.0)                # (TB, 64)

        # FC2
        out = jnp.dot(h.astype(jnp.bfloat16), wf2_ref[...],
                      preferred_element_type=f32) + bf2_ref[...]
        o_ref[...] = out                                        # (TB, 1)

    return kernel


# ----------------------------------------------------------------------------
# host-side parameter preparation (PyTorch layouts -> fused kernel layouts)
# ----------------------------------------------------------------------------
def prepare_params(w1, b1, w2, b2, wf1, bf1, wf2, bf2):
    w1 = np.asarray(w1, np.float32)     # (16, 1, 3, 3)  [cout, cin, dy, dx]
    b1 = np.asarray(b1, np.float32)     # (16,)
    w2 = np.asarray(w2, np.float32)     # (32, 16, 3, 3)
    b2 = np.asarray(b2, np.float32)     # (32,)
    wf1 = np.asarray(wf1, np.float32)   # (64, 512)
    bf1 = np.asarray(bf1, np.float32)   # (64,)
    wf2 = np.asarray(wf2, np.float32)   # (1, 64)
    bf2 = np.asarray(bf2, np.float32)   # (1,)

    # Conv1 weights with fused even/odd-W pool selection and conv2 W padding:
    # W1g[dy, pw, u, wp*16 + c] = w1[c, 0, dy, dx]   where u = 2*(wp-1) + pw + dx,
    # wp in 1..8 (wp = 0, 9 stay zero -> conv2 'same' zero padding).
    W1g = np.zeros((3, 2, 18, 160), np.float32)
    for dy in range(3):
        for pw in range(2):
            for wp in range(1, 9):
                for dx in range(3):
                    u = 2 * (wp - 1) + pw + dx
                    W1g[dy, pw, u, wp * 16:(wp + 1) * 16] = w1[:, 0, dy, dx]

    b1pad = np.zeros((1, 160), np.float32)
    b1pad[0, 16:144] = np.tile(b1, 8)          # zero bias on the padded columns

    # Conv2 weights with fused even/odd-W pool-2 selection:
    # W2g[dy, pw2, wp*16 + cin, j3*32 + cout] = w2[cout, cin, dy, dx],
    # with wp = 2*j3 + pw2 + dx.
    W2g = np.zeros((3, 2, 160, 128), np.float32)
    for dy in range(3):
        for pw2 in range(2):
            for j3 in range(4):
                for dx in range(3):
                    wp = 2 * j3 + pw2 + dx
                    W2g[dy, pw2, wp * 16:(wp + 1) * 16,
                        j3 * 32:(j3 + 1) * 32] = w2[:, :, dy, dx].T

    b2row = np.tile(b2, 4).reshape(1, 128)

    # FC1 weight with the PyTorch NCHW flatten (index = cout*16 + i3*4 + j3)
    # folded in and split by pooled row i3:
    # Wf1blk[i3, j3*32 + cout, o] = wf1[o, cout*16 + i3*4 + j3]
    wf1r = wf1.reshape(64, 32, 4, 4)                        # [o, cout, i3, j3]
    Wf1blk = np.transpose(wf1r, (2, 3, 1, 0)).reshape(4, 128, 64)

    return dict(
        w1g=jnp.asarray(W1g, jnp.bfloat16),
        b1pad=jnp.asarray(b1pad, jnp.float32),
        w2g=jnp.asarray(W2g, jnp.bfloat16),
        b2row=jnp.asarray(b2row, jnp.float32),
        wf1blk=jnp.asarray(Wf1blk, jnp.bfloat16),
        bf1=jnp.asarray(bf1.reshape(1, 64), jnp.float32),
        wf2col=jnp.asarray(wf2.T, jnp.bfloat16),            # (64, 1)
        bf2=jnp.asarray(bf2.reshape(1, 1), jnp.float32),
    )


# ----------------------------------------------------------------------------
# wrapper
# ----------------------------------------------------------------------------
@jax.jit
def simple_cnn_forward(x_nchw, params):
    B, C, H, W = x_nchw.shape
    assert C == 1 and H == 16 and W == 16, "SimpleCNN was built for (1,16,16) inputs"

    TB = _pick_tb(B)
    Bpad = _round_up(B, TB)
    G = Bpad // TB

    x = x_nchw.reshape(B, H, W).astype(jnp.float32)
    xpad = jnp.pad(x, ((0, Bpad - B), (1, 1), (1, 1)))      # (Bpad, 18, 18), 'same' pad
    xprep = jnp.transpose(xpad, (1, 0, 2))                  # (18, Bpad, 18)

    kernel = _make_kernel(TB)
    out = pl.pallas_call(
        kernel,
        out_shape=jax.ShapeDtypeStruct((Bpad, 1), jnp.float32),
        grid=(G,),
        in_specs=[
            pl.BlockSpec((18, TB, 18), lambda g: (0, g, 0)),
            pl.BlockSpec((3, 2, 18, 160), lambda g: (0, 0, 0, 0)),
            pl.BlockSpec((1, 160), lambda g: (0, 0)),
            pl.BlockSpec((3, 2, 160, 128), lambda g: (0, 0, 0, 0)),
            pl.BlockSpec((1, 128), lambda g: (0, 0)),
            pl.BlockSpec((4, 128, 64), lambda g: (0, 0, 0)),
            pl.BlockSpec((1, 64), lambda g: (0, 0)),
            pl.BlockSpec((64, 1), lambda g: (0, 0)),
            pl.BlockSpec((1, 1), lambda g: (0, 0)),
        ],
        out_specs=pl.BlockSpec((TB, 1), lambda g: (g, 0)),
        compiler_params=pltpu.CompilerParams(
            dimension_semantics=("parallel",)),
    )(xprep, params["w1g"], params["b1pad"], params["w2g"], params["b2row"],
      params["wf1blk"], params["bf1"], params["wf2col"], params["bf2"])
    return out[:B]                                           # (B, 1)


# ----------------------------------------------------------------------------
# pure-JAX reference (PyTorch NCHW semantics, f32)
# ----------------------------------------------------------------------------
def ref_forward(x, w1, b1, w2, b2, wf1, bf1, wf2, bf2):
    hp = lax.Precision.HIGHEST
    y = lax.conv_general_dilated(x, w1, (1, 1), ((1, 1), (1, 1)),
                                 dimension_numbers=("NCHW", "OIHW", "NCHW"),
                                 precision=hp)
    y = jnp.maximum(y + b1[None, :, None, None], 0.0)
    y = lax.reduce_window(y, -jnp.inf, lax.max, (1, 1, 2, 2), (1, 1, 2, 2), "VALID")
    y = lax.conv_general_dilated(y, w2, (1, 1), ((1, 1), (1, 1)),
                                 dimension_numbers=("NCHW", "OIHW", "NCHW"),
                                 precision=hp)
    y = jnp.maximum(y + b2[None, :, None, None], 0.0)
    y = lax.reduce_window(y, -jnp.inf, lax.max, (1, 1, 2, 2), (1, 1, 2, 2), "VALID")
    flat = y.reshape(y.shape[0], -1)
    h = jnp.maximum(jnp.dot(flat, wf1.T, precision=hp) + bf1, 0.0)
    return jnp.dot(h, wf2.T, precision=hp) + bf2


# ----------------------------------------------------------------------------
# driver
# ----------------------------------------------------------------------------
if __name__ == "__main__":
    B, H, W = 2, 16, 16                           # sample_input is (1, 16, 16)
    key = jax.random.PRNGKey(0)
    ks = jax.random.split(key, 9)

    x = jax.random.normal(ks[0], (B, 1, H, W), jnp.float32)

    # deterministic synthetic parameters (PyTorch layouts)
    w1 = jax.random.normal(ks[1], (16, 1, 3, 3), jnp.float32) * 0.2
    b1 = jax.random.normal(ks[2], (16,), jnp.float32) * 0.1
    w2 = jax.random.normal(ks[3], (32, 16, 3, 3), jnp.float32) * 0.05
    b2 = jax.random.normal(ks[4], (32,), jnp.float32) * 0.1
    wf1 = jax.random.normal(ks[5], (64, 512), jnp.float32) * 0.05  # flattened_size = 32*4*4
    bf1 = jax.random.normal(ks[6], (64,), jnp.float32) * 0.1
    wf2 = jax.random.normal(ks[7], (1, 64), jnp.float32) * 0.1
    bf2 = jax.random.normal(ks[8], (1,), jnp.float32) * 0.1

    params = prepare_params(w1, b1, w2, b2, wf1, bf1, wf2, bf2)

    out = jax.block_until_ready(simple_cnn_forward(x, params))
    assert out.shape == (B, 1)

    ref = ref_forward(x, w1, b1, w2, b2, wf1, bf1, wf2, bf2)
    # tolerance reflects single-pass bf16 MXU matmuls (f32 accumulation)
    np.testing.assert_allclose(np.asarray(out), np.asarray(ref),
                               rtol=2e-2, atol=2e-2)
    print("KERNEL_OK")
</pallas_src>

<mosaic_0001>
module attributes {stable_mosaic.version = 11 : i64} {
  func.func @kernel(%arg0: i32, %arg1: memref<18x8x18xf32, #tpu.memory_space<vmem>>, %arg2: memref<3x2x18x160xbf16, #tpu.memory_space<vmem>>, %arg3: memref<1x160xf32, #tpu.memory_space<vmem>>, %arg4: memref<3x2x160x128xbf16, #tpu.memory_space<vmem>>, %arg5: memref<1x128xf32, #tpu.memory_space<vmem>>, %arg6: memref<4x128x64xbf16, #tpu.memory_space<vmem>>, %arg7: memref<1x64xf32, #tpu.memory_space<vmem>>, %arg8: memref<64x1xbf16, #tpu.memory_space<vmem>>, %arg9: memref<1x1xf32, #tpu.memory_space<vmem>>, %arg10: memref<8x1xf32, #tpu.memory_space<vmem>>) attributes {dimension_semantics = [#tpu.dimension_semantics<parallel>], iteration_bounds = array<i64: 1>, scalar_prefetch = 0 : i64, scratch_operands = 0 : i64, tpu.core_type = #tpu.core_type<tc>, window_params = [{transform_indices = @transform_0, window_bounds = array<i64: 18, 8, 18>}, {pipeline_mode = #tpu.pipeline_mode<synchronous>, transform_indices = @transform_1, window_bounds = array<i64: 3, 2, 18, 160>}, {pipeline_mode = #tpu.pipeline_mode<synchronous>, transform_indices = @transform_2, window_bounds = array<i64: 1, 160>}, {pipeline_mode = #tpu.pipeline_mode<synchronous>, transform_indices = @transform_3, window_bounds = array<i64: 3, 2, 160, 128>}, {pipeline_mode = #tpu.pipeline_mode<synchronous>, transform_indices = @transform_4, window_bounds = array<i64: 1, 128>}, {pipeline_mode = #tpu.pipeline_mode<synchronous>, transform_indices = @transform_5, window_bounds = array<i64: 4, 128, 64>}, {pipeline_mode = #tpu.pipeline_mode<synchronous>, transform_indices = @transform_6, window_bounds = array<i64: 1, 64>}, {pipeline_mode = #tpu.pipeline_mode<synchronous>, transform_indices = @transform_7, window_bounds = array<i64: 64, 1>}, {pipeline_mode = #tpu.pipeline_mode<synchronous>, transform_indices = @transform_8, window_bounds = array<i64: 1, 1>}, {transform_indices = @transform_9, window_bounds = array<i64: 8, 1>}]} {
    %c0 = arith.constant 0 : index
    %c0_0 = arith.constant 0 : index
    %c0_1 = arith.constant 0 : index
    %0 = vector.load %arg1[%c0, %c0_0, %c0_1] : memref<18x8x18xf32, #tpu.memory_space<vmem>>, vector<18x8x18xf32>
    %1 = arith.truncf %0 : vector<18x8x18xf32> to vector<18x8x18xbf16>
    %2 = vector.extract_strided_slice %1 {offsets = [0, 0, 0], sizes = [1, 8, 18], strides = [1, 1, 1]} : vector<18x8x18xbf16> to vector<1x8x18xbf16>
    %3 = vector.shape_cast %2 : vector<1x8x18xbf16> to vector<8x18xbf16>
    %4 = vector.extract_strided_slice %1 {offsets = [1, 0, 0], sizes = [1, 8, 18], strides = [1, 1, 1]} : vector<18x8x18xbf16> to vector<1x8x18xbf16>
    %5 = vector.shape_cast %4 : vector<1x8x18xbf16> to vector<8x18xbf16>
    %6 = vector.extract_strided_slice %1 {offsets = [2, 0, 0], sizes = [1, 8, 18], strides = [1, 1, 1]} : vector<18x8x18xbf16> to vector<1x8x18xbf16>
    %7 = vector.shape_cast %6 : vector<1x8x18xbf16> to vector<8x18xbf16>
    %8 = vector.extract_strided_slice %1 {offsets = [3, 0, 0], sizes = [1, 8, 18], strides = [1, 1, 1]} : vector<18x8x18xbf16> to vector<1x8x18xbf16>
    %9 = vector.shape_cast %8 : vector<1x8x18xbf16> to vector<8x18xbf16>
    %10 = vector.extract_strided_slice %1 {offsets = [4, 0, 0], sizes = [1, 8, 18], strides = [1, 1, 1]} : vector<18x8x18xbf16> to vector<1x8x18xbf16>
    %11 = vector.shape_cast %10 : vector<1x8x18xbf16> to vector<8x18xbf16>
    %12 = vector.extract_strided_slice %1 {offsets = [5, 0, 0], sizes = [1, 8, 18], strides = [1, 1, 1]} : vector<18x8x18xbf16> to vector<1x8x18xbf16>
    %13 = vector.shape_cast %12 : vector<1x8x18xbf16> to vector<8x18xbf16>
    %14 = vector.extract_strided_slice %1 {offsets = [6, 0, 0], sizes = [1, 8, 18], strides = [1, 1, 1]} : vector<18x8x18xbf16> to vector<1x8x18xbf16>
    %15 = vector.shape_cast %14 : vector<1x8x18xbf16> to vector<8x18xbf16>
    %16 = vector.extract_strided_slice %1 {offsets = [7, 0, 0], sizes = [1, 8, 18], strides = [1, 1, 1]} : vector<18x8x18xbf16> to vector<1x8x18xbf16>
    %17 = vector.shape_cast %16 : vector<1x8x18xbf16> to vector<8x18xbf16>
    %18 = vector.extract_strided_slice %1 {offsets = [8, 0, 0], sizes = [1, 8, 18], strides = [1, 1, 1]} : vector<18x8x18xbf16> to vector<1x8x18xbf16>
    %19 = vector.shape_cast %18 : vector<1x8x18xbf16> to vector<8x18xbf16>
    %20 = vector.extract_strided_slice %1 {offsets = [9, 0, 0], sizes = [1, 8, 18], strides = [1, 1, 1]} : vector<18x8x18xbf16> to vector<1x8x18xbf16>
    %21 = vector.shape_cast %20 : vector<1x8x18xbf16> to vector<8x18xbf16>
    %22 = vector.extract_strided_slice %1 {offsets = [10, 0, 0], sizes = [1, 8, 18], strides = [1, 1, 1]} : vector<18x8x18xbf16> to vector<1x8x18xbf16>
    %23 = vector.shape_cast %22 : vector<1x8x18xbf16> to vector<8x18xbf16>
    %24 = vector.extract_strided_slice %1 {offsets = [11, 0, 0], sizes = [1, 8, 18], strides = [1, 1, 1]} : vector<18x8x18xbf16> to vector<1x8x18xbf16>
    %25 = vector.shape_cast %24 : vector<1x8x18xbf16> to vector<8x18xbf16>
    %26 = vector.extract_strided_slice %1 {offsets = [12, 0, 0], sizes = [1, 8, 18], strides = [1, 1, 1]} : vector<18x8x18xbf16> to vector<1x8x18xbf16>
    %27 = vector.shape_cast %26 : vector<1x8x18xbf16> to vector<8x18xbf16>
    %28 = vector.extract_strided_slice %1 {offsets = [13, 0, 0], sizes = [1, 8, 18], strides = [1, 1, 1]} : vector<18x8x18xbf16> to vector<1x8x18xbf16>
    %29 = vector.shape_cast %28 : vector<1x8x18xbf16> to vector<8x18xbf16>
    %30 = vector.extract_strided_slice %1 {offsets = [14, 0, 0], sizes = [1, 8, 18], strides = [1, 1, 1]} : vector<18x8x18xbf16> to vector<1x8x18xbf16>
    %31 = vector.shape_cast %30 : vector<1x8x18xbf16> to vector<8x18xbf16>
    %32 = vector.extract_strided_slice %1 {offsets = [15, 0, 0], sizes = [1, 8, 18], strides = [1, 1, 1]} : vector<18x8x18xbf16> to vector<1x8x18xbf16>
    %33 = vector.shape_cast %32 : vector<1x8x18xbf16> to vector<8x18xbf16>
    %34 = vector.extract_strided_slice %1 {offsets = [16, 0, 0], sizes = [1, 8, 18], strides = [1, 1, 1]} : vector<18x8x18xbf16> to vector<1x8x18xbf16>
    %35 = vector.shape_cast %34 : vector<1x8x18xbf16> to vector<8x18xbf16>
    %36 = vector.extract_strided_slice %1 {offsets = [17, 0, 0], sizes = [1, 8, 18], strides = [1, 1, 1]} : vector<18x8x18xbf16> to vector<1x8x18xbf16>
    %37 = vector.shape_cast %36 : vector<1x8x18xbf16> to vector<8x18xbf16>
    %38 = tpu.concatenate %3, %7, %11, %15, %19, %23, %27, %31 in 0 : vector<8x18xbf16>, vector<8x18xbf16>, vector<8x18xbf16>, vector<8x18xbf16>, vector<8x18xbf16>, vector<8x18xbf16>, vector<8x18xbf16>, vector<8x18xbf16> -> vector<64x18xbf16>
    %39 = tpu.concatenate %5, %9, %13, %17, %21, %25, %29, %33 in 0 : vector<8x18xbf16>, vector<8x18xbf16>, vector<8x18xbf16>, vector<8x18xbf16>, vector<8x18xbf16>, vector<8x18xbf16>, vector<8x18xbf16>, vector<8x18xbf16> -> vector<64x18xbf16>
    %40 = tpu.concatenate %7, %11, %15, %19, %23, %27, %31, %35 in 0 : vector<8x18xbf16>, vector<8x18xbf16>, vector<8x18xbf16>, vector<8x18xbf16>, vector<8x18xbf16>, vector<8x18xbf16>, vector<8x18xbf16>, vector<8x18xbf16> -> vector<64x18xbf16>
    %41 = tpu.concatenate %9, %13, %17, %21, %25, %29, %33, %37 in 0 : vector<8x18xbf16>, vector<8x18xbf16>, vector<8x18xbf16>, vector<8x18xbf16>, vector<8x18xbf16>, vector<8x18xbf16>, vector<8x18xbf16>, vector<8x18xbf16> -> vector<64x18xbf16>
    %c0_2 = arith.constant 0 : index
    %c0_3 = arith.constant 0 : index
    %c0_4 = arith.constant 0 : index
    %c0_5 = arith.constant 0 : index
    %42 = vector.load %arg2[%c0_2, %c0_3, %c0_4, %c0_5] : memref<3x2x18x160xbf16, #tpu.memory_space<vmem>>, vector<1x1x18x160xbf16>
    %43 = vector.shape_cast %42 : vector<1x1x18x160xbf16> to vector<18x160xbf16>
    %cst = arith.constant dense<0.000000e+00> : vector<64x160xf32>
    %44 = tpu.matmul %38, %43, %cst {dimension_numbers = #tpu.dot_dimension_numbers<[1], [0], [0], [1], [0, 0, 1, 1], [], []>} : vector<64x18xbf16>, vector<18x160xbf16>, vector<64x160xf32> -> vector<64x160xf32>
    %c1 = arith.constant 1 : index
    %c0_6 = arith.constant 0 : index
    %c0_7 = arith.constant 0 : index
    %c0_8 = arith.constant 0 : index
    %45 = vector.load %arg2[%c1, %c0_6, %c0_7, %c0_8] : memref<3x2x18x160xbf16, #tpu.memory_space<vmem>>, vector<1x1x18x160xbf16>
    %46 = vector.shape_cast %45 : vector<1x1x18x160xbf16> to vector<18x160xbf16>
    %cst_9 = arith.constant dense<0.000000e+00> : vector<64x160xf32>
    %47 = tpu.matmul %39, %46, %cst_9 {dimension_numbers = #tpu.dot_dimension_numbers<[1], [0], [0], [1], [0, 0, 1, 1], [], []>} : vector<64x18xbf16>, vector<18x160xbf16>, vector<64x160xf32> -> vector<64x160xf32>
    %48 = arith.addf %44, %47 : vector<64x160xf32>
    %c2 = arith.constant 2 : index
    %c0_10 = arith.constant 0 : index
    %c0_11 = arith.constant 0 : index
    %c0_12 = arith.constant 0 : index
    %49 = vector.load %arg2[%c2, %c0_10, %c0_11, %c0_12] : memref<3x2x18x160xbf16, #tpu.memory_space<vmem>>, vector<1x1x18x160xbf16>
    %50 = vector.shape_cast %49 : vector<1x1x18x160xbf16> to vector<18x160xbf16>
    %cst_13 = arith.constant dense<0.000000e+00> : vector<64x160xf32>
    %51 = tpu.matmul %40, %50, %cst_13 {dimension_numbers = #tpu.dot_dimension_numbers<[1], [0], [0], [1], [0, 0, 1, 1], [], []>} : vector<64x18xbf16>, vector<18x160xbf16>, vector<64x160xf32> -> vector<64x160xf32>
    %52 = arith.addf %48, %51 : vector<64x160xf32>
    %c0_14 = arith.constant 0 : index
    %c1_15 = arith.constant 1 : index
    %c0_16 = arith.constant 0 : index
    %c0_17 = arith.constant 0 : index
    %53 = vector.load %arg2[%c0_14, %c1_15, %c0_16, %c0_17] : memref<3x2x18x160xbf16, #tpu.memory_space<vmem>>, vector<1x1x18x160xbf16>
    %54 = vector.shape_cast %53 : vector<1x1x18x160xbf16> to vector<18x160xbf16>
    %cst_18 = arith.constant dense<0.000000e+00> : vector<64x160xf32>
    %55 = tpu.matmul %38, %54, %cst_18 {dimension_numbers = #tpu.dot_dimension_numbers<[1], [0], [0], [1], [0, 0, 1, 1], [], []>} : vector<64x18xbf16>, vector<18x160xbf16>, vector<64x160xf32> -> vector<64x160xf32>
    %c1_19 = arith.constant 1 : index
    %c1_20 = arith.constant 1 : index
    %c0_21 = arith.constant 0 : index
    %c0_22 = arith.constant 0 : index
    %56 = vector.load %arg2[%c1_19, %c1_20, %c0_21, %c0_22] : memref<3x2x18x160xbf16, #tpu.memory_space<vmem>>, vector<1x1x18x160xbf16>
    %57 = vector.shape_cast %56 : vector<1x1x18x160xbf16> to vector<18x160xbf16>
    %cst_23 = arith.constant dense<0.000000e+00> : vector<64x160xf32>
    %58 = tpu.matmul %39, %57, %cst_23 {dimension_numbers = #tpu.dot_dimension_numbers<[1], [0], [0], [1], [0, 0, 1, 1], [], []>} : vector<64x18xbf16>, vector<18x160xbf16>, vector<64x160xf32> -> vector<64x160xf32>
    %59 = arith.addf %55, %58 : vector<64x160xf32>
    %c2_24 = arith.constant 2 : index
    %c1_25 = arith.constant 1 : index
    %c0_26 = arith.constant 0 : index
    %c0_27 = arith.constant 0 : index
    %60 = vector.load %arg2[%c2_24, %c1_25, %c0_26, %c0_27] : memref<3x2x18x160xbf16, #tpu.memory_space<vmem>>, vector<1x1x18x160xbf16>
    %61 = vector.shape_cast %60 : vector<1x1x18x160xbf16> to vector<18x160xbf16>
    %cst_28 = arith.constant dense<0.000000e+00> : vector<64x160xf32>
    %62 = tpu.matmul %40, %61, %cst_28 {dimension_numbers = #tpu.dot_dimension_numbers<[1], [0], [0], [1], [0, 0, 1, 1], [], []>} : vector<64x18xbf16>, vector<18x160xbf16>, vector<64x160xf32> -> vector<64x160xf32>
    %63 = arith.addf %59, %62 : vector<64x160xf32>
    %64 = arith.maximumf %52, %63 : vector<64x160xf32>
    %c0_29 = arith.constant 0 : index
    %c0_30 = arith.constant 0 : index
    %c0_31 = arith.constant 0 : index
    %c0_32 = arith.constant 0 : index
    %65 = vector.load %arg2[%c0_29, %c0_30, %c0_31, %c0_32] : memref<3x2x18x160xbf16, #tpu.memory_space<vmem>>, vector<1x1x18x160xbf16>
    %66 = vector.shape_cast %65 : vector<1x1x18x160xbf16> to vector<18x160xbf16>
    %cst_33 = arith.constant dense<0.000000e+00> : vector<64x160xf32>
    %67 = tpu.matmul %39, %66, %cst_33 {dimension_numbers = #tpu.dot_dimension_numbers<[1], [0], [0], [1], [0, 0, 1, 1], [], []>} : vector<64x18xbf16>, vector<18x160xbf16>, vector<64x160xf32> -> vector<64x160xf32>
    %c1_34 = arith.constant 1 : index
    %c0_35 = arith.constant 0 : index
    %c0_36 = arith.constant 0 : index
    %c0_37 = arith.constant 0 : index
    %68 = vector.load %arg2[%c1_34, %c0_35, %c0_36, %c0_37] : memref<3x2x18x160xbf16, #tpu.memory_space<vmem>>, vector<1x1x18x160xbf16>
    %69 = vector.shape_cast %68 : vector<1x1x18x160xbf16> to vector<18x160xbf16>
    %cst_38 = arith.constant dense<0.000000e+00> : vector<64x160xf32>
    %70 = tpu.matmul %40, %69, %cst_38 {dimension_numbers = #tpu.dot_dimension_numbers<[1], [0], [0], [1], [0, 0, 1, 1], [], []>} : vector<64x18xbf16>, vector<18x160xbf16>, vector<64x160xf32> -> vector<64x160xf32>
    %71 = arith.addf %67, %70 : vector<64x160xf32>
    %c2_39 = arith.constant 2 : index
    %c0_40 = arith.constant 0 : index
    %c0_41 = arith.constant 0 : index
    %c0_42 = arith.constant 0 : index
    %72 = vector.load %arg2[%c2_39, %c0_40, %c0_41, %c0_42] : memref<3x2x18x160xbf16, #tpu.memory_space<vmem>>, vector<1x1x18x160xbf16>
    %73 = vector.shape_cast %72 : vector<1x1x18x160xbf16> to vector<18x160xbf16>
    %cst_43 = arith.constant dense<0.000000e+00> : vector<64x160xf32>
    %74 = tpu.matmul %41, %73, %cst_43 {dimension_numbers = #tpu.dot_dimension_numbers<[1], [0], [0], [1], [0, 0, 1, 1], [], []>} : vector<64x18xbf16>, vector<18x160xbf16>, vector<64x160xf32> -> vector<64x160xf32>
    %75 = arith.addf %71, %74 : vector<64x160xf32>
    %c0_44 = arith.constant 0 : index
    %c1_45 = arith.constant 1 : index
    %c0_46 = arith.constant 0 : index
    %c0_47 = arith.constant 0 : index
    %76 = vector.load %arg2[%c0_44, %c1_45, %c0_46, %c0_47] : memref<3x2x18x160xbf16, #tpu.memory_space<vmem>>, vector<1x1x18x160xbf16>
    %77 = vector.shape_cast %76 : vector<1x1x18x160xbf16> to vector<18x160xbf16>
    %cst_48 = arith.constant dense<0.000000e+00> : vector<64x160xf32>
    %78 = tpu.matmul %39, %77, %cst_48 {dimension_numbers = #tpu.dot_dimension_numbers<[1], [0], [0], [1], [0, 0, 1, 1], [], []>} : vector<64x18xbf16>, vector<18x160xbf16>, vector<64x160xf32> -> vector<64x160xf32>
    %c1_49 = arith.constant 1 : index
    %c1_50 = arith.constant 1 : index
    %c0_51 = arith.constant 0 : index
    %c0_52 = arith.constant 0 : index
    %79 = vector.load %arg2[%c1_49, %c1_50, %c0_51, %c0_52] : memref<3x2x18x160xbf16, #tpu.memory_space<vmem>>, vector<1x1x18x160xbf16>
    %80 = vector.shape_cast %79 : vector<1x1x18x160xbf16> to vector<18x160xbf16>
    %cst_53 = arith.constant dense<0.000000e+00> : vector<64x160xf32>
    %81 = tpu.matmul %40, %80, %cst_53 {dimension_numbers = #tpu.dot_dimension_numbers<[1], [0], [0], [1], [0, 0, 1, 1], [], []>} : vector<64x18xbf16>, vector<18x160xbf16>, vector<64x160xf32> -> vector<64x160xf32>
    %82 = arith.addf %78, %81 : vector<64x160xf32>
    %c2_54 = arith.constant 2 : index
    %c1_55 = arith.constant 1 : index
    %c0_56 = arith.constant 0 : index
    %c0_57 = arith.constant 0 : index
    %83 = vector.load %arg2[%c2_54, %c1_55, %c0_56, %c0_57] : memref<3x2x18x160xbf16, #tpu.memory_space<vmem>>, vector<1x1x18x160xbf16>
    %84 = vector.shape_cast %83 : vector<1x1x18x160xbf16> to vector<18x160xbf16>
    %cst_58 = arith.constant dense<0.000000e+00> : vector<64x160xf32>
    %85 = tpu.matmul %41, %84, %cst_58 {dimension_numbers = #tpu.dot_dimension_numbers<[1], [0], [0], [1], [0, 0, 1, 1], [], []>} : vector<64x18xbf16>, vector<18x160xbf16>, vector<64x160xf32> -> vector<64x160xf32>
    %86 = arith.addf %82, %85 : vector<64x160xf32>
    %87 = arith.maximumf %75, %86 : vector<64x160xf32>
    %88 = arith.maximumf %64, %87 : vector<64x160xf32>
    %c0_59 = arith.constant 0 : index
    %c0_60 = arith.constant 0 : index
    %89 = vector.load %arg3[%c0_59, %c0_60] : memref<1x160xf32, #tpu.memory_space<vmem>>, vector<1x160xf32>
    %90 = vector.broadcast %89 : vector<1x160xf32> to vector<64x160xf32>
    %91 = arith.addf %88, %90 : vector<64x160xf32>
    %cst_61 = arith.constant 0.000000e+00 : f32
    %92 = vector.broadcast %cst_61 : f32 to vector<64x160xf32>
    %93 = arith.maximumf %91, %92 : vector<64x160xf32>
    %94 = arith.truncf %93 : vector<64x160xf32> to vector<64x160xbf16>
    %cst_62 = arith.constant 0.000000e+00 : bf16
    %95 = vector.broadcast %cst_62 : bf16 to vector<8x160xbf16>
    %96 = vector.extract_strided_slice %94 {offsets = [0, 0], sizes = [8, 160], strides = [1, 1]} : vector<64x160xbf16> to vector<8x160xbf16>
    %97 = vector.extract_strided_slice %94 {offsets = [8, 0], sizes = [8, 160], strides = [1, 1]} : vector<64x160xbf16> to vector<8x160xbf16>
    %98 = vector.extract_strided_slice %94 {offsets = [16, 0], sizes = [8, 160], strides = [1, 1]} : vector<64x160xbf16> to vector<8x160xbf16>
    %99 = vector.extract_strided_slice %94 {offsets = [24, 0], sizes = [8, 160], strides = [1, 1]} : vector<64x160xbf16> to vector<8x160xbf16>
    %100 = vector.extract_strided_slice %94 {offsets = [32, 0], sizes = [8, 160], strides = [1, 1]} : vector<64x160xbf16> to vector<8x160xbf16>
    %101 = vector.extract_strided_slice %94 {offsets = [40, 0], sizes = [8, 160], strides = [1, 1]} : vector<64x160xbf16> to vector<8x160xbf16>
    %102 = vector.extract_strided_slice %94 {offsets = [48, 0], sizes = [8, 160], strides = [1, 1]} : vector<64x160xbf16> to vector<8x160xbf16>
    %103 = vector.extract_strided_slice %94 {offsets = [56, 0], sizes = [8, 160], strides = [1, 1]} : vector<64x160xbf16> to vector<8x160xbf16>
    %104 = tpu.concatenate %95, %97, %99, %101 in 0 : vector<8x160xbf16>, vector<8x160xbf16>, vector<8x160xbf16>, vector<8x160xbf16> -> vector<32x160xbf16>
    %105 = tpu.concatenate %96, %98, %100, %102 in 0 : vector<8x160xbf16>, vector<8x160xbf16>, vector<8x160xbf16>, vector<8x160xbf16> -> vector<32x160xbf16>
    %106 = tpu.concatenate %97, %99, %101, %103 in 0 : vector<8x160xbf16>, vector<8x160xbf16>, vector<8x160xbf16>, vector<8x160xbf16> -> vector<32x160xbf16>
    %107 = tpu.concatenate %98, %100, %102, %95 in 0 : vector<8x160xbf16>, vector<8x160xbf16>, vector<8x160xbf16>, vector<8x160xbf16> -> vector<32x160xbf16>
    %c0_63 = arith.constant 0 : index
    %c0_64 = arith.constant 0 : index
    %c0_65 = arith.constant 0 : index
    %c0_66 = arith.constant 0 : index
    %108 = vector.load %arg4[%c0_63, %c0_64, %c0_65, %c0_66] : memref<3x2x160x128xbf16, #tpu.memory_space<vmem>>, vector<1x1x160x128xbf16>
    %109 = vector.shape_cast %108 : vector<1x1x160x128xbf16> to vector<160x128xbf16>
    %cst_67 = arith.constant dense<0.000000e+00> : vector<32x128xf32>
    %110 = tpu.matmul %104, %109, %cst_67 {dimension_numbers = #tpu.dot_dimension_numbers<[1], [0], [0], [1], [0, 0, 1, 1], [], []>} : vector<32x160xbf16>, vector<160x128xbf16>, vector<32x128xf32> -> vector<32x128xf32>
    %c1_68 = arith.constant 1 : index
    %c0_69 = arith.constant 0 : index
    %c0_70 = arith.constant 0 : index
    %c0_71 = arith.constant 0 : index
    %111 = vector.load %arg4[%c1_68, %c0_69, %c0_70, %c0_71] : memref<3x2x160x128xbf16, #tpu.memory_space<vmem>>, vector<1x1x160x128xbf16>
    %112 = vector.shape_cast %111 : vector<1x1x160x128xbf16> to vector<160x128xbf16>
    %cst_72 = arith.constant dense<0.000000e+00> : vector<32x128xf32>
    %113 = tpu.matmul %105, %112, %cst_72 {dimension_numbers = #tpu.dot_dimension_numbers<[1], [0], [0], [1], [0, 0, 1, 1], [], []>} : vector<32x160xbf16>, vector<160x128xbf16>, vector<32x128xf32> -> vector<32x128xf32>
    %114 = arith.addf %110, %113 : vector<32x128xf32>
    %c2_73 = arith.constant 2 : index
    %c0_74 = arith.constant 0 : index
    %c0_75 = arith.constant 0 : index
    %c0_76 = arith.constant 0 : index
    %115 = vector.load %arg4[%c2_73, %c0_74, %c0_75, %c0_76] : memref<3x2x160x128xbf16, #tpu.memory_space<vmem>>, vector<1x1x160x128xbf16>
    %116 = vector.shape_cast %115 : vector<1x1x160x128xbf16> to vector<160x128xbf16>
    %cst_77 = arith.constant dense<0.000000e+00> : vector<32x128xf32>
    %117 = tpu.matmul %106, %116, %cst_77 {dimension_numbers = #tpu.dot_dimension_numbers<[1], [0], [0], [1], [0, 0, 1, 1], [], []>} : vector<32x160xbf16>, vector<160x128xbf16>, vector<32x128xf32> -> vector<32x128xf32>
    %118 = arith.addf %114, %117 : vector<32x128xf32>
    %c0_78 = arith.constant 0 : index
    %c1_79 = arith.constant 1 : index
    %c0_80 = arith.constant 0 : index
    %c0_81 = arith.constant 0 : index
    %119 = vector.load %arg4[%c0_78, %c1_79, %c0_80, %c0_81] : memref<3x2x160x128xbf16, #tpu.memory_space<vmem>>, vector<1x1x160x128xbf16>
    %120 = vector.shape_cast %119 : vector<1x1x160x128xbf16> to vector<160x128xbf16>
    %cst_82 = arith.constant dense<0.000000e+00> : vector<32x128xf32>
    %121 = tpu.matmul %104, %120, %cst_82 {dimension_numbers = #tpu.dot_dimension_numbers<[1], [0], [0], [1], [0, 0, 1, 1], [], []>} : vector<32x160xbf16>, vector<160x128xbf16>, vector<32x128xf32> -> vector<32x128xf32>
    %c1_83 = arith.constant 1 : index
    %c1_84 = arith.constant 1 : index
    %c0_85 = arith.constant 0 : index
    %c0_86 = arith.constant 0 : index
    %122 = vector.load %arg4[%c1_83, %c1_84, %c0_85, %c0_86] : memref<3x2x160x128xbf16, #tpu.memory_space<vmem>>, vector<1x1x160x128xbf16>
    %123 = vector.shape_cast %122 : vector<1x1x160x128xbf16> to vector<160x128xbf16>
    %cst_87 = arith.constant dense<0.000000e+00> : vector<32x128xf32>
    %124 = tpu.matmul %105, %123, %cst_87 {dimension_numbers = #tpu.dot_dimension_numbers<[1], [0], [0], [1], [0, 0, 1, 1], [], []>} : vector<32x160xbf16>, vector<160x128xbf16>, vector<32x128xf32> -> vector<32x128xf32>
    %125 = arith.addf %121, %124 : vector<32x128xf32>
    %c2_88 = arith.constant 2 : index
    %c1_89 = arith.constant 1 : index
    %c0_90 = arith.constant 0 : index
    %c0_91 = arith.constant 0 : index
    %126 = vector.load %arg4[%c2_88, %c1_89, %c0_90, %c0_91] : memref<3x2x160x128xbf16, #tpu.memory_space<vmem>>, vector<1x1x160x128xbf16>
    %127 = vector.shape_cast %126 : vector<1x1x160x128xbf16> to vector<160x128xbf16>
    %cst_92 = arith.constant dense<0.000000e+00> : vector<32x128xf32>
    %128 = tpu.matmul %106, %127, %cst_92 {dimension_numbers = #tpu.dot_dimension_numbers<[1], [0], [0], [1], [0, 0, 1, 1], [], []>} : vector<32x160xbf16>, vector<160x128xbf16>, vector<32x128xf32> -> vector<32x128xf32>
    %129 = arith.addf %125, %128 : vector<32x128xf32>
    %130 = arith.maximumf %118, %129 : vector<32x128xf32>
    %c0_93 = arith.constant 0 : index
    %c0_94 = arith.constant 0 : index
    %c0_95 = arith.constant 0 : index
    %c0_96 = arith.constant 0 : index
    %131 = vector.load %arg4[%c0_93, %c0_94, %c0_95, %c0_96] : memref<3x2x160x128xbf16, #tpu.memory_space<vmem>>, vector<1x1x160x128xbf16>
    %132 = vector.shape_cast %131 : vector<1x1x160x128xbf16> to vector<160x128xbf16>
    %cst_97 = arith.constant dense<0.000000e+00> : vector<32x128xf32>
    %133 = tpu.matmul %105, %132, %cst_97 {dimension_numbers = #tpu.dot_dimension_numbers<[1], [0], [0], [1], [0, 0, 1, 1], [], []>} : vector<32x160xbf16>, vector<160x128xbf16>, vector<32x128xf32> -> vector<32x128xf32>
    %c1_98 = arith.constant 1 : index
    %c0_99 = arith.constant 0 : index
    %c0_100 = arith.constant 0 : index
    %c0_101 = arith.constant 0 : index
    %134 = vector.load %arg4[%c1_98, %c0_99, %c0_100, %c0_101] : memref<3x2x160x128xbf16, #tpu.memory_space<vmem>>, vector<1x1x160x128xbf16>
    %135 = vector.shape_cast %134 : vector<1x1x160x128xbf16> to vector<160x128xbf16>
    %cst_102 = arith.constant dense<0.000000e+00> : vector<32x128xf32>
    %136 = tpu.matmul %106, %135, %cst_102 {dimension_numbers = #tpu.dot_dimension_numbers<[1], [0], [0], [1], [0, 0, 1, 1], [], []>} : vector<32x160xbf16>, vector<160x128xbf16>, vector<32x128xf32> -> vector<32x128xf32>
    %137 = arith.addf %133, %136 : vector<32x128xf32>
    %c2_103 = arith.constant 2 : index
    %c0_104 = arith.constant 0 : index
    %c0_105 = arith.constant 0 : index
    %c0_106 = arith.constant 0 : index
    %138 = vector.load %arg4[%c2_103, %c0_104, %c0_105, %c0_106] : memref<3x2x160x128xbf16, #tpu.memory_space<vmem>>, vector<1x1x160x128xbf16>
    %139 = vector.shape_cast %138 : vector<1x1x160x128xbf16> to vector<160x128xbf16>
    %cst_107 = arith.constant dense<0.000000e+00> : vector<32x128xf32>
    %140 = tpu.matmul %107, %139, %cst_107 {dimension_numbers = #tpu.dot_dimension_numbers<[1], [0], [0], [1], [0, 0, 1, 1], [], []>} : vector<32x160xbf16>, vector<160x128xbf16>, vector<32x128xf32> -> vector<32x128xf32>
    %141 = arith.addf %137, %140 : vector<32x128xf32>
    %c0_108 = arith.constant 0 : index
    %c1_109 = arith.constant 1 : index
    %c0_110 = arith.constant 0 : index
    %c0_111 = arith.constant 0 : index
    %142 = vector.load %arg4[%c0_108, %c1_109, %c0_110, %c0_111] : memref<3x2x160x128xbf16, #tpu.memory_space<vmem>>, vector<1x1x160x128xbf16>
    %143 = vector.shape_cast %142 : vector<1x1x160x128xbf16> to vector<160x128xbf16>
    %cst_112 = arith.constant dense<0.000000e+00> : vector<32x128xf32>
    %144 = tpu.matmul %105, %143, %cst_112 {dimension_numbers = #tpu.dot_dimension_numbers<[1], [0], [0], [1], [0, 0, 1, 1], [], []>} : vector<32x160xbf16>, vector<160x128xbf16>, vector<32x128xf32> -> vector<32x128xf32>
    %c1_113 = arith.constant 1 : index
    %c1_114 = arith.constant 1 : index
    %c0_115 = arith.constant 0 : index
    %c0_116 = arith.constant 0 : index
    %145 = vector.load %arg4[%c1_113, %c1_114, %c0_115, %c0_116] : memref<3x2x160x128xbf16, #tpu.memory_space<vmem>>, vector<1x1x160x128xbf16>
    %146 = vector.shape_cast %145 : vector<1x1x160x128xbf16> to vector<160x128xbf16>
    %cst_117 = arith.constant dense<0.000000e+00> : vector<32x128xf32>
    %147 = tpu.matmul %106, %146, %cst_117 {dimension_numbers = #tpu.dot_dimension_numbers<[1], [0], [0], [1], [0, 0, 1, 1], [], []>} : vector<32x160xbf16>, vector<160x128xbf16>, vector<32x128xf32> -> vector<32x128xf32>
    %148 = arith.addf %144, %147 : vector<32x128xf32>
    %c2_118 = arith.constant 2 : index
    %c1_119 = arith.constant 1 : index
    %c0_120 = arith.constant 0 : index
    %c0_121 = arith.constant 0 : index
    %149 = vector.load %arg4[%c2_118, %c1_119, %c0_120, %c0_121] : memref<3x2x160x128xbf16, #tpu.memory_space<vmem>>, vector<1x1x160x128xbf16>
    %150 = vector.shape_cast %149 : vector<1x1x160x128xbf16> to vector<160x128xbf16>
    %cst_122 = arith.constant dense<0.000000e+00> : vector<32x128xf32>
    %151 = tpu.matmul %107, %150, %cst_122 {dimension_numbers = #tpu.dot_dimension_numbers<[1], [0], [0], [1], [0, 0, 1, 1], [], []>} : vector<32x160xbf16>, vector<160x128xbf16>, vector<32x128xf32> -> vector<32x128xf32>
    %152 = arith.addf %148, %151 : vector<32x128xf32>
    %153 = arith.maximumf %141, %152 : vector<32x128xf32>
    %154 = arith.maximumf %130, %153 : vector<32x128xf32>
    %c0_123 = arith.constant 0 : index
    %c0_124 = arith.constant 0 : index
    %155 = vector.load %arg5[%c0_123, %c0_124] : memref<1x128xf32, #tpu.memory_space<vmem>>, vector<1x128xf32>
    %156 = vector.broadcast %155 : vector<1x128xf32> to vector<32x128xf32>
    %157 = arith.addf %154, %156 : vector<32x128xf32>
    %cst_125 = arith.constant 0.000000e+00 : f32
    %158 = vector.broadcast %cst_125 : f32 to vector<32x128xf32>
    %159 = arith.maximumf %157, %158 : vector<32x128xf32>
    %160 = arith.truncf %159 : vector<32x128xf32> to vector<32x128xbf16>
    %161 = vector.extract_strided_slice %160 {offsets = [0, 0], sizes = [8, 128], strides = [1, 1]} : vector<32x128xbf16> to vector<8x128xbf16>
    %c0_126 = arith.constant 0 : index
    %c0_127 = arith.constant 0 : index
    %c0_128 = arith.constant 0 : index
    %162 = vector.load %arg6[%c0_126, %c0_127, %c0_128] : memref<4x128x64xbf16, #tpu.memory_space<vmem>>, vector<1x128x64xbf16>
    %163 = vector.shape_cast %162 : vector<1x128x64xbf16> to vector<128x64xbf16>
    %cst_129 = arith.constant dense<0.000000e+00> : vector<8x64xf32>
    %164 = tpu.matmul %161, %163, %cst_129 {dimension_numbers = #tpu.dot_dimension_numbers<[1], [0], [0], [1], [0, 0, 1, 1], [], []>} : vector<8x128xbf16>, vector<128x64xbf16>, vector<8x64xf32> -> vector<8x64xf32>
    %165 = vector.extract_strided_slice %160 {offsets = [8, 0], sizes = [8, 128], strides = [1, 1]} : vector<32x128xbf16> to vector<8x128xbf16>
    %c1_130 = arith.constant 1 : index
    %c0_131 = arith.constant 0 : index
    %c0_132 = arith.constant 0 : index
    %166 = vector.load %arg6[%c1_130, %c0_131, %c0_132] : memref<4x128x64xbf16, #tpu.memory_space<vmem>>, vector<1x128x64xbf16>
    %167 = vector.shape_cast %166 : vector<1x128x64xbf16> to vector<128x64xbf16>
    %cst_133 = arith.constant dense<0.000000e+00> : vector<8x64xf32>
    %168 = tpu.matmul %165, %167, %cst_133 {dimension_numbers = #tpu.dot_dimension_numbers<[1], [0], [0], [1], [0, 0, 1, 1], [], []>} : vector<8x128xbf16>, vector<128x64xbf16>, vector<8x64xf32> -> vector<8x64xf32>
    %169 = arith.addf %164, %168 : vector<8x64xf32>
    %170 = vector.extract_strided_slice %160 {offsets = [16, 0], sizes = [8, 128], strides = [1, 1]} : vector<32x128xbf16> to vector<8x128xbf16>
    %c2_134 = arith.constant 2 : index
    %c0_135 = arith.constant 0 : index
    %c0_136 = arith.constant 0 : index
    %171 = vector.load %arg6[%c2_134, %c0_135, %c0_136] : memref<4x128x64xbf16, #tpu.memory_space<vmem>>, vector<1x128x64xbf16>
    %172 = vector.shape_cast %171 : vector<1x128x64xbf16> to vector<128x64xbf16>
    %cst_137 = arith.constant dense<0.000000e+00> : vector<8x64xf32>
    %173 = tpu.matmul %170, %172, %cst_137 {dimension_numbers = #tpu.dot_dimension_numbers<[1], [0], [0], [1], [0, 0, 1, 1], [], []>} : vector<8x128xbf16>, vector<128x64xbf16>, vector<8x64xf32> -> vector<8x64xf32>
    %174 = arith.addf %169, %173 : vector<8x64xf32>
    %175 = vector.extract_strided_slice %160 {offsets = [24, 0], sizes = [8, 128], strides = [1, 1]} : vector<32x128xbf16> to vector<8x128xbf16>
    %c3 = arith.constant 3 : index
    %c0_138 = arith.constant 0 : index
    %c0_139 = arith.constant 0 : index
    %176 = vector.load %arg6[%c3, %c0_138, %c0_139] : memref<4x128x64xbf16, #tpu.memory_space<vmem>>, vector<1x128x64xbf16>
    %177 = vector.shape_cast %176 : vector<1x128x64xbf16> to vector<128x64xbf16>
    %cst_140 = arith.constant dense<0.000000e+00> : vector<8x64xf32>
    %178 = tpu.matmul %175, %177, %cst_140 {dimension_numbers = #tpu.dot_dimension_numbers<[1], [0], [0], [1], [0, 0, 1, 1], [], []>} : vector<8x128xbf16>, vector<128x64xbf16>, vector<8x64xf32> -> vector<8x64xf32>
    %179 = arith.addf %174, %178 : vector<8x64xf32>
    %c0_141 = arith.constant 0 : index
    %c0_142 = arith.constant 0 : index
    %180 = vector.load %arg7[%c0_141, %c0_142] : memref<1x64xf32, #tpu.memory_space<vmem>>, vector<1x64xf32>
    %181 = vector.broadcast %180 : vector<1x64xf32> to vector<8x64xf32>
    %182 = arith.addf %179, %181 : vector<8x64xf32>
    %cst_143 = arith.constant 0.000000e+00 : f32
    %183 = vector.broadcast %cst_143 : f32 to vector<8x64xf32>
    %184 = arith.maximumf %182, %183 : vector<8x64xf32>
    %185 = arith.truncf %184 : vector<8x64xf32> to vector<8x64xbf16>
    %c0_144 = arith.constant 0 : index
    %c0_145 = arith.constant 0 : index
    %186 = vector.load %arg8[%c0_144, %c0_145] : memref<64x1xbf16, #tpu.memory_space<vmem>>, vector<64x1xbf16>
    %cst_146 = arith.constant dense<0.000000e+00> : vector<8x1xf32>
    %187 = tpu.matmul %185, %186, %cst_146 {dimension_numbers = #tpu.dot_dimension_numbers<[1], [0], [0], [1], [0, 0, 1, 1], [], []>} : vector<8x64xbf16>, vector<64x1xbf16>, vector<8x1xf32> -> vector<8x1xf32>
    %c0_147 = arith.constant 0 : index
    %c0_148 = arith.constant 0 : index
    %188 = vector.load %arg9[%c0_147, %c0_148] : memref<1x1xf32, #tpu.memory_space<vmem>>, vector<1x1xf32>
    %189 = vector.broadcast %188 : vector<1x1xf32> to vector<8x1xf32>
    %190 = arith.addf %187, %189 : vector<8x1xf32>
    %c0_149 = arith.constant 0 : index
    %c0_150 = arith.constant 0 : index
    %191 = vector.load %arg10[%c0_149, %c0_150] : memref<8x1xf32, #tpu.memory_space<vmem>>, vector<8x1xf32>
    tpu.vector_store %arg10[%c0_149, %c0_150], %190 {strides = array<i32>} : memref<8x1xf32, #tpu.memory_space<vmem>>, vector<8x1xf32>,
    return
  }
  func.func @transform_0(%arg0: i32) -> (i32, i32, i32) {
    %c0_i32 = arith.constant 0 : i32
    %c0_i32_0 = arith.constant 0 : i32
    %c0_i32_1 = arith.constant 0 : i32
    return %c0_i32, %arg0, %c0_i32_0 : i32, i32, i32
  }
  func.func @transform_1(%arg0: i32) -> (i32, i32, i32, i32) {
    %c0_i32 = arith.constant 0 : i32
    %c0_i32_0 = arith.constant 0 : i32
    %c0_i32_1 = arith.constant 0 : i32
    %c0_i32_2 = arith.constant 0 : i32
    %c0_i32_3 = arith.constant 0 : i32
    return %c0_i32, %c0_i32_0, %c0_i32_1, %c0_i32_2 : i32, i32, i32, i32
  }
  func.func @transform_2(%arg0: i32) -> (i32, i32) {
    %c0_i32 = arith.constant 0 : i32
    %c0_i32_0 = arith.constant 0 : i32
    %c0_i32_1 = arith.constant 0 : i32
    return %c0_i32, %c0_i32_0 : i32, i32
  }
  func.func @transform_3(%arg0: i32) -> (i32, i32, i32, i32) {
    %c0_i32 = arith.constant 0 : i32
    %c0_i32_0 = arith.constant 0 : i32
    %c0_i32_1 = arith.constant 0 : i32
    %c0_i32_2 = arith.constant 0 : i32
    %c0_i32_3 = arith.constant 0 : i32
    return %c0_i32, %c0_i32_0, %c0_i32_1, %c0_i32_2 : i32, i32, i32, i32
  }
  func.func @transform_4(%arg0: i32) -> (i32, i32) {
    %c0_i32 = arith.constant 0 : i32
    %c0_i32_0 = arith.constant 0 : i32
    %c0_i32_1 = arith.constant 0 : i32
    return %c0_i32, %c0_i32_0 : i32, i32
  }
  func.func @transform_5(%arg0: i32) -> (i32, i32, i32) {
    %c0_i32 = arith.constant 0 : i32
    %c0_i32_0 = arith.constant 0 : i32
    %c0_i32_1 = arith.constant 0 : i32
    %c0_i32_2 = arith.constant 0 : i32
    return %c0_i32, %c0_i32_0, %c0_i32_1 : i32, i32, i32
  }
  func.func @transform_6(%arg0: i32) -> (i32, i32) {
    %c0_i32 = arith.constant 0 : i32
    %c0_i32_0 = arith.constant 0 : i32
    %c0_i32_1 = arith.constant 0 : i32
    return %c0_i32, %c0_i32_0 : i32, i32
  }
  func.func @transform_7(%arg0: i32) -> (i32, i32) {
    %c0_i32 = arith.constant 0 : i32
    %c0_i32_0 = arith.constant 0 : i32
    %c0_i32_1 = arith.constant 0 : i32
    return %c0_i32, %c0_i32_0 : i32, i32
  }
  func.func @transform_8(%arg0: i32) -> (i32, i32) {
    %c0_i32 = arith.constant 0 : i32
    %c0_i32_0 = arith.constant 0 : i32
    %c0_i32_1 = arith.constant 0 : i32
    return %c0_i32, %c0_i32_0 : i32, i32
  }
  func.func @transform_9(%arg0: i32) -> (i32, i32) {
    %c0_i32 = arith.constant 0 : i32
    %c0_i32_0 = arith.constant 0 : i32
    return %arg0, %c0_i32 : i32, i32
  }
}

</mosaic_0001>

<bundles_post_ra>
// kernel: simple_cnn_forward.1
= control target key start
LH: loop header
LB: loop body
LE: loop exit
PB: predicated region body
PF: predicated region fallthrough
CT: control target
= control target key end

     0   :  { %v5430_v1 = vmov 0   ;;  %vm183_vm0 = vcmask 1040384   ;;  %vm79_vm1 = vcmask 1043456   ;;  %vm174_vm2 = vcmask 146432   ;;  %s5420_s1 = inlined_call_operand.vmem [shape: bf16[3,2,18,160], index: 1, kind: input, shape index: {}]   ;;  %s5421_s0 = inlined_call_operand.vmem [shape: f32[18,8,18], index: 0, kind: input, shape index: {}]   ;;  %s5422_s3 = inlined_call_operand.vmem [shape: bf16[3,2,160,128], index: 3, kind: input, shape index: {}]   ;;  %s5423_s2 = inlined_call_operand.vmem [shape: f32[1,160], index: 2, kind: input, shape index: {}]   ;;  %s5424_s5 = inlined_call_operand.vmem [shape: bf16[4,128,64], index: 5, kind: input, shape index: {}]   ;;  %s5425_s4 = inlined_call_operand.vmem [shape: f32[1,128], index: 4, kind: input, shape index: {}]   ;;  %s5426_s7 = inlined_call_operand.vmem [shape: bf16[64,1], index: 7, kind: input, shape index: {}]   ;;  %s5427_s8 = inlined_call_operand.<no memory space> [shape: f32[1,1], index: 8, kind: input, shape index: {}]   ;;  %s5428_s6 = inlined_call_operand.vmem [shape: f32[1,64], index: 6, kind: input, shape index: {}]   ;;  %s5429_s9 = inlined_call_operand.vmem [shape: f32[8,1], index: 9, kind: output, shape index: {}]  }
   0x1   :  { %v3984_v0 = vld [vmem:[%s5420_s1 + $0x34] ss:$8 sps:$4 sm:$0xff]   ;;  %222 = vmatprep.mubr.bf16.mxu0 %v5430_v1  ;;  %252 = vmatprep.mubr.bf16.mxu1 %v5430_v1  ;;  %v3991_v2 = vld [vmem:[%s5420_s1 + $0x30] ss:$8 sps:$4 sm:$0xff]   ;;  %v3095_v3 = vld [vmem:[%s5420_s1 + $0x40] sm:$0x11] }
   0x2   :  { %v36_v4 = vld [vmem:[%s5421_s0 + $0x8] sm:$0xff]  ;;  %190 = vmatprep.subr.bf16.mxu0 %v3984_v0  ;;  %3603 = vmatprep.subr.bf16.mxu1 %v3984_v0  ;;  %v4001_v5 = vcombine.high %v3095_v3, %v3095_v3  ;;  %v3098_v6 = vcombine.low %v3095_v3, %v3095_v3  ;;  %v38_v7 = vld [vmem:[%s5421_s0 + $0x18] sm:$0xff]  ;;  %v154_v28 = vld [vmem:[%s5420_s1 + $0x10] sm:$0x11]  ;;  %vm1533_vm3 = vcmask 261120   ;;  %vm3930_vm5 = vmmov 0  }
   0x3   :  { %v54_v8 = vpack.c.bf16 %v36_v4, %v36_v4  ;;  %v48_v9 = vld [vmem:[%s5421_s0 + $0x68] sm:$0xff]  ;;  %v50_v10 = vld [vmem:[%s5421_s0 + $0x78] sm:$0xff]  ;;  %191 = vmatpush1.bf16.msra.mxu0 %v3991_v2  ;;  %3605 = vmatpush1.bf16.msra.mxu1 %v3991_v2  ;;  %v4014_v11 = vpack.c.bf16 %v38_v7, %v38_v7  ;;  %v4082_v32 = vcombine.high %v154_v28, %v154_v28  ;;  %v37_v48 = vld [vmem:[%s5421_s0 + $0x10] sm:$0xff]  ;;  %vm3043_vm6 = vcmask 523264  }
   0x4   :  { %v4016_v12 = vpack.c.bf16 %v48_v9, %v48_v9  ;;  %v4018_v13 = vpack.c.bf16 %v50_v10, %v50_v10  ;;  %3100 = vmatprep.subr.msk.bf16.mxu0 %vm183_vm0, %v4001_v5  ;;  %3604 = vmatprep.subr.msk.bf16.mxu1 %vm183_vm0, %v4001_v5  ;;  %v4025_v14 = vsel %vm183_vm0, %v3098_v6, 0  ;;  %v4030_v15 = vld [vmem:[%s5420_s1 + $0x4c] ss:$8 sps:$4 sm:$0xff]   ;;  %v3131_v16 = vld [vmem:[%s5420_s1 + $0x58] sm:$0x11]  ;;  %v3107_v36 = vcombine.low %v154_v28, %v154_v28  ;;  %v35_v54 = vld [vmem:[%s5421_s0] sm:$0xff] }
   0x5   :  { %v93_v17 = vrot.slane %v4014_v11, 4  ;;  %v42_v19 = vld [vmem:[%s5421_s0 + $0x38] sm:$0xff]  ;;  %v4052_v22 = vld [vmem:[%s5420_s1 + $0x48] ss:$8 sps:$4 sm:$0xff]   ;;  %v4057_v24 = vcombine.high %v3131_v16, %v3131_v16  ;;  %v3134_v25 = vcombine.low %v3131_v16, %v3131_v16  ;;  %v4065_v27 = vld [vmem:[%s5420_s1 + $0x4] ss:$8 sps:$4 sm:$0xff]   ;;  %v4156_v53 = vpack.c.bf16 %v37_v48, %v37_v48 }
   0x6   :  { %v99_v18 = vrot.slane %v4018_v13, 4  ;;  %v4054_v23 = vpack.c.bf16 %v42_v19, %v42_v19  ;;  %v40_v26 = vld [vmem:[%s5421_s0 + $0x28] sm:$0xff]  ;;  %v4093_v34 = vld [vmem:[%s5420_s1 + $0x1c] ss:$8 sps:$4 sm:$0xff]   ;;  %v4110_v39 = vld [vmem:[%s5420_s1 + $0x18] ss:$8 sps:$4 sm:$0xff]   ;;  %v53_v55 = vpack.c.bf16 %v35_v54, %v35_v54 }
   0x7   :  { %193 = vmatpush1.bf16.msra.mxu0 %v4025_v14  ;;  %3606 = vmatpush1.bf16.msra.mxu1 %v4025_v14  ;;  %v4043_v20 = vsel %vm79_vm1, %v54_v8, %v93_v17  ;;  %v4077_v29 = vld [vmem:[%s5420_s1] ss:$8 sps:$4 sm:$0xff]   ;;  %v58_v30 = vpack.c.bf16 %v40_v26, %v40_v26  ;;  %v4087_v33 = vsel %vm183_vm0, %v3134_v25, 0  ;;  %v46_v35 = vld [vmem:[%s5421_s0 + $0x58] sm:$0xff]  ;;  %v4121_v43 = vsel %vm183_vm0, %v3107_v36, 0  ;;  %v41_v58 = vld [vmem:[%s5421_s0 + $0x30] sm:$0xff] }
   0x8   :  { %v4047_v21 = vsel %vm79_vm1, %v4016_v12, %v99_v18  ;;  %516 = vmatprep.subr.bf16.mxu1 %v4030_v15  ;;  %v95_v31 = vrot.slane %v4054_v23, 4  ;;  %292 = vmatprep.subr.bf16.mxu0 %v4065_v27  ;;  %v3128_v37 = vld [vmem:[%s5420_s1 + $0x28] sm:$0x11]  ;;  %v4112_v40 = vpack.c.bf16 %v46_v35, %v46_v35  ;;  %v4148_v50 = vld [vmem:[%s5420_s1 + $0x7c] ss:$8 sps:$4 sm:$0xff]   ;;  %v72_v56 = vrot.slane %v4156_v53, 4  ;;  %vm3235_vm4 = vmneg %vm79_vm1 }
   0x9   :  { %v44_v41 = vld [vmem:[%s5421_s0 + $0x48] sm:$0xff]  ;;  %v3143_v42 = vcombine.low %v3128_v37, %v3128_v37  ;;  %v4123_v44 = vcombine.high %v3128_v37, %v3128_v37  ;;  %v133_v51 = vrot.slane %v58_v30, 4  ;;  %v3116_v59 = vld [vmem:[%s5420_s1 + $0x70] sm:$0x11]  ;;  %v4181_v61 = vpack.c.bf16 %v41_v58, %v41_v58  ;;  %v39_v62 = vld [vmem:[%s5421_s0 + $0x20] sm:$0xff] }
   0xa   :  { %3101 = vmatmul.mubr.msk.bf16.vlgmr.msra.gmra.mrb[0].mxu0 %vm174_vm2, %v4043_v20  ;;  %3104 = vmatmul.mubr.msk.bf16.vlgmr.msra.gmra.mrb[0].mxu1 %vm174_vm2, %v4047_v21  ;;  %v4105_v38 = vsel %vm79_vm1, %v58_v30, %v95_v31  ;;  %v4128_v45 = vld [vmem:[%s5420_s1 + $0x64] ss:$8 sps:$4 sm:$0xff]   ;;  %v62_v46 = vpack.c.bf16 %v44_v41, %v44_v41  ;;  %v97_v47 = vrot.slane %v4112_v40, 4  ;;  %v82_v60 = vsel %vm79_vm1, %v53_v55, %v72_v56  ;;  %v4189_v63 = vld [vmem:[%s5420_s1 + $0x60] ss:$8 sps:$4 sm:$0xff]   ;;  %v45_v9 = vld [vmem:[%s5421_s0 + $0x50] sm:$0xff] }
   0xb   :  { %517 = vmatpush1.bf16.msra.mxu1 %v4052_v22  ;;  %232 = vmatprep.mubr.bf16.mxu0 %v5430_v1  ;;  %v4143_v49 = vsel %vm183_vm0, %v3143_v42, 0  ;;  %v4172_v57 = vsel %vm79_vm1, %v4014_v11, %v133_v51  ;;  %v4191_v3 = vcombine.high %v3116_v59, %v3116_v59  ;;  %v3119_v4 = vcombine.low %v3116_v59, %v3116_v59  ;;  %v43_v18 = vld [vmem:[%s5421_s0 + $0x40] sm:$0xff]  ;;  %v49_v26 = vld [vmem:[%s5421_s0 + $0x70] sm:$0xff]  ;;  %v52_v42 = vld [vmem:[%s5421_s0 + $0x88] sm:$0xff] }
   0xc   :  { %3136 = vmatprep.subr.msk.bf16.mxu1 %vm183_vm0, %v4057_v24  ;;  %548 = vmatprep.mubr.bf16.mxu1 %v5430_v1  ;;  %v4154_v52 = vsel %vm79_vm1, %v62_v46, %v97_v47  ;;  %v57_v6 = vpack.c.bf16 %v39_v62, %v39_v62  ;;  %v74_v7 = vrot.slane %v4181_v61, 4  ;;  %v135_v8 = vrot.slane %v62_v46, 4  ;;  %v4238_v31 = vld [vmem:[%s5420_s1 + $0x78] ss:$8 sps:$4 sm:$0xff]  }
   0xd   :  { %293 = vmatpush1.bf16.msra.mxu0 %v4077_v29  ;;  %v4206_v10 = vsel %vm183_vm0, %v3119_v4, 0  ;;  %v63_v17 = vpack.c.bf16 %v45_v9, %v45_v9  ;;  %v61_v19 = vpack.c.bf16 %v43_v18, %v43_v18  ;;  %v137_v25 = vrot.slane %v4016_v12, 4  ;;  %v47_v35 = vld [vmem:[%s5421_s0 + $0x60] sm:$0xff]  ;;  %v4540_v9 = vld [vmem:[%s5422_s3 + $0x138] sm:$0xff]  }
   0xe   :  { %3109 = vmatprep.subr.msk.bf16.mxu0 %vm183_vm0, %v4082_v32  ;;  %v4210_v11 = vsel %vm79_vm1, %v4054_v23, %v135_v8  ;;  %v85_v16 = vsel %vm79_vm1, %v57_v6, %v74_v7  ;;  %v67_v12 = vpack.c.bf16 %v49_v26, %v49_v26  ;;  %v70_v47 = vpack.c.bf16 %v52_v42, %v52_v42  ;;  %v4490_v59 = vld [vmem:[%s5422_s3 + $0x120] sm:$0xff]   ;;  %v4535_v8 = vld [vmem:[%s5422_s3 + $0xe8] sm:$0xff]  }
   0xf   :  { %519 = vmatpush1.bf16.msra.mxu1 %v4087_v33  ;;  %v76_v23 = vrot.slane %v63_v17, 4  ;;  %v4232_v28 = vsel %vm79_vm1, %v4112_v40, %v137_v25  ;;  %v65_v40 = vpack.c.bf16 %v47_v35, %v47_v35  ;;  %v113_v55 = vrot.slane %v57_v6, 4  ;;  %5455 = vst [vmem:[#allocation11_spill] sm:$0xff] %v4490_v59  ;;  %5460 = vst [vmem:[#allocation16_spill] sm:$0xff] %v4535_v8 }
  0x10   :  { %610 = vmatprep.subr.bf16.mxu1 %v4093_v34  ;;  %v78_v41 = vrot.slane %v67_v12, 4  ;;  %v139_v48 = vrot.slane %v70_v47, 4  ;;  %5461 = vst [vmem:[#allocation17_spill] sm:$0xff] %v4540_v9  ;;  %vm3087_vm7 = vcmask 7168  }
  0x11   :  { %295 = vmatpush1.bf16.msra.mxu0 %v4121_v43  ;;  %v88_v30 = vsel %vm79_vm1, %v61_v19, %v76_v23  ;;  %v122_v56 = vsel %vm79_vm1, %v4156_v53, %v113_v55  ;;  %v117_v53 = vrot.slane %v65_v40, 4 }
  0x12   :  { %3102 = vmatmul.mubr.msk.bf16.gmra.mrb[4].mxu0 %vm174_vm2, %v4105_v38  ;;  %3137 = vmatmul.mubr.msk.bf16.vlgmr.msra.gmra.mrb[4].mxu1 %vm174_vm2, %v4043_v20  ;;  %v91_v51 = vsel %vm79_vm1, %v65_v40, %v78_v41  ;;  %v4263_v54 = vsel %vm79_vm1, %v4018_v13, %v139_v48  ;;  %v115_v13 = vrot.slane %v61_v19, 4 }
  0x13   :  { %611 = vmatpush1.bf16.msra.mxu1 %v4110_v39  ;;  %242 = vmatprep.mubr.bf16.mxu0 %v5430_v1 }
  0x14   :  { %558 = vmatprep.mubr.bf16.mxu1 %v5430_v1  ;;  %3145 = vmatprep.subr.msk.bf16.mxu1 %vm183_vm0, %v4123_v44 }
  0x15   :  { %398 = vmatprep.subr.bf16.mxu0 %v4128_v45 }
  0x17   :  { %613 = vmatpush1.bf16.msra.mxu1 %v4143_v49 }
  0x18   :  { %708 = vmatprep.subr.bf16.mxu1 %v4148_v50 }
  0x1a   :  { %3103 = vmatmul.mubr.msk.bf16.gmra.mrb[8].mxu0 %vm174_vm2, %v4154_v52  ;;  %3138 = vmatmul.mubr.msk.bf16.gmra.mrb[8].mxu1 %vm174_vm2, %v4105_v38 }
  0x1b   :  { %324 = vmatprep.mubr.bf16.mxu0 %v5430_v1  ;;  %568 = vmatprep.mubr.bf16.mxu1 %v5430_v1 }
  0x22   :  { %3110 = vmatmul.mubr.msk.bf16.vlgmr.msra.gmra.mrb[0].mxu0 %vm174_vm2, %v82_v60  ;;  %3139 = vmatmul.mubr.msk.bf16.gmra.mrb[12].mxu1 %vm174_vm2, %v4154_v52 }
  0x23   :  { %334 = vmatprep.mubr.bf16.mxu0 %v5430_v1  ;;  %578 = vmatprep.mubr.bf16.mxu1 %v5430_v1 }
  0x24   :  { %399 = vmatpush1.bf16.msra.mxu0 %v4189_v63 }
  0x25   :  { %3121 = vmatprep.subr.msk.bf16.mxu0 %vm183_vm0, %v4191_v3 }
  0x28   :  { %401 = vmatpush1.bf16.msra.mxu0 %v4206_v10 }
  0x29   :  { %813 = vmatprep.subr.bf16.mxu0 %v3984_v0  ;;  %v3152_v0 = vld [vmem:[%s5420_s1 + $0x88] sm:$0x11] }
  0x2a   :  { %3111 = vmatmul.mubr.msk.bf16.gmra.mrb[4].mxu0 %vm174_vm2, %v85_v16  ;;  %3140 = vmatmul.mubr.msk.bf16.gmra.mrb[16].mxu1 %vm174_vm2, %v4047_v21  ;;  %v4243_v36 = vcombine.high %v3152_v0, %v3152_v0  ;;  %v3155_v37 = vcombine.low %v3152_v0, %v3152_v0 }
  0x2b   :  { %344 = vmatprep.mubr.bf16.mxu0 %v5430_v1  ;;  %642 = vmatprep.mubr.bf16.mxu1 %v5430_v1 }
  0x2c   :  { %v4256_v46 = vsel %vm183_vm0, %v3155_v37, 0 }
  0x32   :  { %3112 = vmatmul.mubr.msk.bf16.gmra.mrb[8].mxu0 %vm174_vm2, %v88_v30  ;;  %3146 = vmatmul.mubr.msk.bf16.vlgmr.msra.gmra.mrb[4].mxu1 %vm174_vm2, %v82_v60  ;;  %v4499_v60 = vld [vmem:[%s5422_s3 + $0xd8] sm:$0xff]  }
  0x33   :  { %709 = vmatpush1.bf16.msra.mxu1 %v4238_v31  ;;  %354 = vmatprep.mubr.bf16.mxu0 %v5430_v1  ;;  %5456 = vst [vmem:[#allocation12_spill] sm:$0xff] %v4499_v60 }
  0x34   :  { %652 = vmatprep.mubr.bf16.mxu1 %v5430_v1  ;;  %3157 = vmatprep.subr.msk.bf16.mxu1 %vm183_vm0, %v4243_v36 }
  0x37   :  { %711 = vmatpush1.bf16.msra.mxu1 %v4256_v46 }
  0x38   :  { %1056 = vmatprep.subr.bf16.mxu1 %v4030_v15  ;;  %v125_v15 = vsel %vm79_vm1, %v4181_v61, %v115_v13  ;;  %v4504_v61 = vld [vmem:[%s5422_s3 + $0x128] sm:$0xff]  }
  0x39   :  { %5457 = vst [vmem:[#allocation13_spill] sm:$0xff] %v4504_v61 }
  0x3a   :  { %3113 = vmatmul.mubr.msk.bf16.gmra.mrb[12].mxu0 %vm174_vm2, %v91_v51  ;;  %3147 = vmatmul.mubr.msk.bf16.gmra.mrb[8].mxu1 %vm174_vm2, %v85_v16 }
  0x3b   :  { %430 = vmatprep.mubr.bf16.mxu0 %v5430_v1  ;;  %662 = vmatprep.mubr.bf16.mxu1 %v5430_v1 }
  0x42   :  { %3122 = vmatmul.mubr.msk.bf16.vlgmr.msra.gmra.mrb[0].mxu0 %vm174_vm2, %v122_v56  ;;  %3148 = vmatmul.mubr.msk.bf16.gmra.mrb[12].mxu1 %vm174_vm2, %v88_v30 }
  0x43   :  { %440 = vmatprep.mubr.bf16.mxu0 %v5430_v1  ;;  %672 = vmatprep.mubr.bf16.mxu1 %v5430_v1 }
  0x44   :  { %814 = vmatpush1.bf16.msra.mxu0 %v3991_v2  ;;  %v51_v2 = vld [vmem:[%s5421_s0 + $0x80] sm:$0xff] }
  0x45   :  { %3162 = vmatprep.subr.msk.bf16.mxu0 %vm183_vm0, %v4001_v5  ;;  %v128_v5 = vsel %vm79_vm1, %v63_v17, %v117_v53  ;;  %v69_v58 = vpack.c.bf16 %v51_v2, %v51_v2 }
  0x48   :  { %816 = vmatpush1.bf16.msra.mxu0 %v4025_v14  ;;  %v119_v14 = vrot.slane %v69_v58, 4 }
  0x49   :  { %886 = vmatprep.subr.bf16.mxu0 %v4065_v27 }
  0x4a   :  { %3123 = vmatmul.mubr.msk.bf16.gmra.mrb[4].mxu0 %vm174_vm2, %v125_v15  ;;  %3149 = vmatmul.mubr.msk.bf16.gmra.mrb[16].mxu1 %vm174_vm2, %v91_v51  ;;  %v131_v27 = vsel %vm79_vm1, %v67_v12, %v119_v14 }
  0x4b   :  { %450 = vmatprep.mubr.bf16.mxu0 %v5430_v1  ;;  %740 = vmatprep.mubr.bf16.mxu1 %v5430_v1 }
  0x52   :  { %3124 = vmatmul.mubr.msk.bf16.gmra.mrb[8].mxu0 %vm174_vm2, %v128_v5  ;;  %3158 = vmatmul.mubr.msk.bf16.vlgmr.msra.gmra.mrb[4].mxu1 %vm174_vm2, %v122_v56 }
  0x53   :  { %1057 = vmatpush1.bf16.msra.mxu1 %v4052_v22  ;;  %460 = vmatprep.mubr.bf16.mxu0 %v5430_v1 }
  0x54   :  { %750 = vmatprep.mubr.bf16.mxu1 %v5430_v1  ;;  %3177 = vmatprep.subr.msk.bf16.mxu1 %vm183_vm0, %v4057_v24 }
  0x57   :  { %1059 = vmatpush1.bf16.msra.mxu1 %v4087_v33  ;;  %v4414_v33 = vld [vmem:[%s5422_s3 + $0xa8] sm:$0xff]  }
  0x58   :  { %1129 = vmatprep.subr.bf16.mxu1 %v4093_v34  ;;  %v4419_v34 = vld [vmem:[%s5422_s3 + $0xf8] sm:$0xff]  }
  0x5a   :  { %3125 = vmatmul.mubr.msk.bf16.gmra.mrb[12].mxu0 %vm174_vm2, %v131_v27  ;;  %3159 = vmatmul.mubr.msk.bf16.gmra.mrb[8].mxu1 %vm174_vm2, %v125_v15 }
  0x5b   :  { %760 = vmatprep.mubr.bf16.mxu1 %v5430_v1  ;;  %845 = vmatprep.mubr.bf16.mxu0 %v5430_v1 }
  0x62   :  { %3160 = vmatmul.mubr.msk.bf16.gmra.mrb[12].mxu1 %vm174_vm2, %v128_v5  ;;  %3163 = vmatmul.mubr.msk.bf16.vlgmr.msra.gmra.mrb[16].mxu0 %vm174_vm2, %v122_v56 }
  0x63   :  { %770 = vmatprep.mubr.bf16.mxu1 %v5430_v1  ;;  %855 = vmatprep.mubr.bf16.mxu0 %v5430_v1 }
  0x64   :  { %887 = vmatpush1.bf16.msra.mxu0 %v4077_v29  ;;  %v4401_v29 = vld [vmem:[%s5422_s3 + $0xa0] sm:$0xff]  }
  0x65   :  { %3167 = vmatprep.subr.msk.bf16.mxu0 %vm183_vm0, %v4082_v32  ;;  %v4406_v32 = vld [vmem:[%s5422_s3 + $0xf0] sm:$0xff]  }
  0x68   :  { %889 = vmatpush1.bf16.msra.mxu0 %v4121_v43  ;;  %v4442_v43 = vld [vmem:[%s5422_s3 + $0xb8] sm:$0xff]  }
  0x69   :  { %967 = vmatprep.subr.bf16.mxu0 %v4128_v45  ;;  %5448 = vst [vmem:[#allocation4_spill] sm:$0xff] %v4442_v43  ;;  %v4457_v45 = vld [vmem:[%s5422_s3 + $0xc0] sm:$0xff]  }
  0x6a   :  { %3161 = vmatmul.mubr.msk.bf16.gmra.mrb[16].mxu1 %vm174_vm2, %v131_v27  ;;  %3164 = vmatmul.mubr.msk.bf16.gmra.mrb[20].mxu0 %vm174_vm2, %v125_v15  ;;  %5450 = vst [vmem:[#allocation6_spill] sm:$0xff] %v4457_v45 }
  0x6b   :  { %865 = vmatprep.mubr.bf16.mxu0 %v5430_v1  ;;  %1088 = vmatprep.mubr.bf16.mxu1 %v5430_v1 }
  0x72   :  { %3165 = vmatmul.mubr.msk.bf16.gmra.mrb[24].mxu0 %vm174_vm2, %v128_v5  ;;  %3178 = vmatmul.mubr.msk.bf16.vlgmr.msra.gmra.mrb[20].mxu1 %vm174_vm2, %v122_v56 }
  0x73   :  { %1130 = vmatpush1.bf16.msra.mxu1 %v4110_v39  ;;  %875 = vmatprep.mubr.bf16.mxu0 %v5430_v1  ;;  %v4434_v39 = vld [vmem:[%s5422_s3 + $0x100] sm:$0xff]  }
  0x74   :  { %1098 = vmatprep.mubr.bf16.mxu1 %v5430_v1  ;;  %3182 = vmatprep.subr.msk.bf16.mxu1 %vm183_vm0, %v4123_v44  ;;  %5447 = vst [vmem:[#allocation3_spill] sm:$0xff] %v4434_v39  ;;  %v4447_v44 = vld [vmem:[%s5422_s3 + $0x108] sm:$0xff]  }
  0x75   :  { %5449 = vst [vmem:[#allocation5_spill] sm:$0xff] %v4447_v44 }
  0x77   :  { %1132 = vmatpush1.bf16.msra.mxu1 %v4143_v49  ;;  %v4462_v49 = vld [vmem:[%s5422_s3 + $0x110] sm:$0xff]  }
  0x78   :  { %1202 = vmatprep.subr.bf16.mxu1 %v4148_v50  ;;  %5451 = vst [vmem:[#allocation7_spill] sm:$0xff] %v4462_v49  ;;  %v4471_v50 = vld [vmem:[%s5422_s3 + $0xc8] sm:$0xff]  }
  0x79   :  { %5452 = vst [vmem:[#allocation8_spill] sm:$0xff] %v4471_v50 }
  0x7a   :  { %3166 = vmatmul.mubr.msk.bf16.gmra.mrb[28].mxu0 %vm174_vm2, %v131_v27  ;;  %3179 = vmatmul.mubr.msk.bf16.gmra.mrb[24].mxu1 %vm174_vm2, %v125_v15 }
  0x7b   :  { %918 = vmatprep.mubr.bf16.mxu0 %v5430_v1  ;;  %1108 = vmatprep.mubr.bf16.mxu1 %v5430_v1 }
  0x82   :  { %3168 = vmatmul.mubr.msk.bf16.vlgmr.msra.gmra.mrb[16].mxu0 %vm174_vm2, %v4043_v20  ;;  %3180 = vmatmul.mubr.msk.bf16.gmra.mrb[28].mxu1 %vm174_vm2, %v128_v5 }
  0x83   :  { %928 = vmatprep.mubr.bf16.mxu0 %v5430_v1  ;;  %1118 = vmatprep.mubr.bf16.mxu1 %v5430_v1 }
  0x84   :  { %968 = vmatpush1.bf16.msra.mxu0 %v4189_v63  ;;  %v4515_v63 = vld [vmem:[%s5422_s3 + $0xe0] sm:$0xff]  }
  0x85   :  { %3172 = vmatprep.subr.msk.bf16.mxu0 %vm183_vm0, %v4191_v3  ;;  %5458 = vst [vmem:[#allocation14_spill] sm:$0xff] %v4515_v63  ;;  %v4520_v3 = vld [vmem:[%s5422_s3 + $0x130] sm:$0xff]  }
  0x86   :  { %5459 = vst [vmem:[#allocation15_spill] sm:$0xff] %v4520_v3 }
  0x88   :  { %970 = vmatpush1.bf16.msra.mxu0 %v4206_v10 }
  0x89   :  { %1538 = vmatprep.subr.bf16.mxu0 %v5430_v1 }
  0x8a   :  { %3169 = vmatmul.mubr.msk.bf16.gmra.mrb[20].mxu0 %vm174_vm2, %v4105_v38  ;;  %3181 = vmatmul.mubr.msk.bf16.gmra.mrb[32].mxu1 %vm174_vm2, %v131_v27 }
  0x8b   :  { %938 = vmatprep.mubr.bf16.mxu0 %v5430_v1  ;;  %1161 = vmatprep.mubr.bf16.mxu1 %v5430_v1 }
  0x92   :  { %3170 = vmatmul.mubr.msk.bf16.gmra.mrb[24].mxu0 %vm174_vm2, %v4154_v52  ;;  %3183 = vmatmul.mubr.msk.bf16.vlgmr.msra.gmra.mrb[20].mxu1 %vm174_vm2, %v4043_v20 }
  0x93   :  { %1203 = vmatpush1.bf16.msra.mxu1 %v4238_v31  ;;  %948 = vmatprep.mubr.bf16.mxu0 %v5430_v1 }
  0x94   :  { %1171 = vmatprep.mubr.bf16.mxu1 %v5430_v1  ;;  %3187 = vmatprep.subr.msk.bf16.mxu1 %vm183_vm0, %v4243_v36 }
  0x97   :  { %1205 = vmatpush1.bf16.msra.mxu1 %v4256_v46 }
  0x98   :  { %1940 = vmatprep.subr.bf16.mxu1 %v5430_v1 }
  0x9a   :  { %3171 = vmatmul.mubr.msk.bf16.gmra.mrb[28].mxu0 %vm174_vm2, %v4047_v21  ;;  %3184 = vmatmul.mubr.msk.bf16.gmra.mrb[24].mxu1 %vm174_vm2, %v4105_v38  ;;  %v4429_v38 = vld [vmem:[%s5422_s3 + $0xb0] sm:$0xff]  }
  0x9b   :  { %999 = vmatprep.mubr.bf16.mxu0 %v5430_v1  ;;  %1181 = vmatprep.mubr.bf16.mxu1 %v5430_v1 }
  0xa2   :  { %3173 = vmatmul.mubr.msk.bf16.vlgmr.msra.gmra.mrb[16].mxu0 %vm174_vm2, %v4172_v57  ;;  %3185 = vmatmul.mubr.msk.bf16.gmra.mrb[28].mxu1 %vm174_vm2, %v4154_v52  ;;  %v4476_v52 = vld [vmem:[%s5422_s3 + $0x118] sm:$0xff]  }
  0xa3   :  { %1009 = vmatprep.mubr.bf16.mxu0 %v5430_v1  ;;  %1191 = vmatprep.mubr.bf16.mxu1 %v5430_v1  ;;  %5453 = vst [vmem:[#allocation9_spill] sm:$0xff] %v4476_v52 }
  0xa4   :  { %1539 = vmatpush1.bf16.msra.mxu0 %v4401_v29 }
  0xa5   :  { %1540 = vmatprep.subr.bf16.mxu0 %v5430_v1 }
  0xa8   :  { %1541 = vmatpush1.bf16.msra.mxu0 %v4414_v33 }
  0xa9   :  { %1542 = vmatprep.subr.bf16.mxu0 %v5430_v1 }
  0xaa   :  { %3174 = vmatmul.mubr.msk.bf16.gmra.mrb[20].mxu0 %vm174_vm2, %v4210_v11  ;;  %3186 = vmatmul.mubr.msk.bf16.gmra.mrb[32].mxu1 %vm174_vm2, %v4047_v21 }
  0xab   :  { %1019 = vmatprep.mubr.bf16.mxu0 %v5430_v1  ;;  %1234 = vmatprep.mubr.bf16.mxu1 %v5430_v1 }
  0xac   :  { %1543 = vmatpush1.bf16.msra.mxu0 %v4429_v38 }
  0xad   :  { %1544 = vmatprep.subr.bf16.mxu0 %v5430_v1 }
  0xb0   :  { %1545 = vmatpush1.bf16.msra.mxu0 %v4442_v43 }
  0xb1   :  { %1546 = vmatprep.subr.bf16.mxu0 %v5430_v1 }
  0xb2   :  { %3175 = vmatmul.mubr.msk.bf16.gmra.mrb[24].mxu0 %vm174_vm2, %v4232_v28  ;;  %3188 = vmatmul.mubr.msk.bf16.vlgmr.msra.gmra.mrb[20].mxu1 %vm174_vm2, %v4172_v57  ;;  %v4485_v57 = vld [vmem:[%s5422_s3 + $0xd0] sm:$0xff]  }
  0xb3   :  { %1029 = vmatprep.mubr.bf16.mxu0 %v5430_v1  ;;  %1244 = vmatprep.mubr.bf16.mxu1 %v5430_v1  ;;  %5454 = vst [vmem:[#allocation10_spill] sm:$0xff] %v4485_v57 }
  0xb4   :  { %1941 = vmatpush1.bf16.msra.mxu1 %v4406_v32  ;;  %1547 = vmatpush1.bf16.msra.mxu0 %v4457_v45 }
  0xb5   :  { %1942 = vmatprep.subr.bf16.mxu1 %v5430_v1  ;;  %1548 = vmatprep.subr.bf16.mxu0 %v5430_v1 }
  0xb8   :  { %1943 = vmatpush1.bf16.msra.mxu1 %v4419_v34  ;;  %1549 = vmatpush1.bf16.msra.mxu0 %v4471_v50 }
  0xb9   :  { %1944 = vmatprep.subr.bf16.mxu1 %v5430_v1  ;;  %1550 = vmatprep.subr.bf16.mxu0 %v5430_v1 }
  0xba   :  { %3176 = vmatmul.mubr.msk.bf16.gmra.mrb[28].mxu0 %vm174_vm2, %v4263_v54  ;;  %3189 = vmatmul.mubr.msk.bf16.gmra.mrb[24].mxu1 %vm174_vm2, %v4210_v11 }
  0xbb   :  { %1254 = vmatprep.mubr.bf16.mxu1 %v5430_v1 }
  0xbc   :  { %1945 = vmatpush1.bf16.msra.mxu1 %v4434_v39  ;;  %1551 = vmatpush1.bf16.msra.mxu0 %v4485_v57 }
  0xbd   :  { %1946 = vmatprep.subr.bf16.mxu1 %v5430_v1  ;;  %1552 = vmatprep.subr.bf16.mxu0 %v5430_v1 }
  0xc0   :  { %1947 = vmatpush1.bf16.msra.mxu1 %v4447_v44  ;;  %1553 = vmatpush1.bf16.msra.mxu0 %v4499_v60 }
  0xc1   :  { %1948 = vmatprep.subr.bf16.mxu1 %v5430_v1  ;;  %1554 = vmatprep.subr.bf16.mxu0 %v5430_v1 }
  0xc2   :  { %3190 = vmatmul.mubr.msk.bf16.gmra.mrb[28].mxu1 %vm174_vm2, %v4232_v28 }
  0xc3   :  { %1264 = vmatprep.mubr.bf16.mxu1 %v5430_v1 }
  0xc4   :  { %1949 = vmatpush1.bf16.msra.mxu1 %v4462_v49  ;;  %1555 = vmatpush1.bf16.msra.mxu0 %v4515_v63 }
  0xc5   :  { %1950 = vmatprep.subr.bf16.mxu1 %v5430_v1  ;;  %1556 = vmatprep.subr.bf16.mxu0 %v5430_v1 }
  0xc8   :  { %1951 = vmatpush1.bf16.msra.mxu1 %v4476_v52  ;;  %1557 = vmatpush1.bf16.msra.mxu0 %v4535_v8 }
  0xc9   :  { %1952 = vmatprep.subr.bf16.mxu1 %v5430_v1  ;;  %1651 = vmatprep.subr.bf16.mxu0 %v5430_v1 }
  0xca   :  { %3191 = vmatmul.mubr.msk.bf16.gmra.mrb[32].mxu1 %vm174_vm2, %v4263_v54 }
  0xcc   :  { %1953 = vmatpush1.bf16.msra.mxu1 %v4490_v59 }
  0xcd   :  { %1954 = vmatprep.subr.bf16.mxu1 %v5430_v1 }
  0xd0   :  { %1955 = vmatpush1.bf16.msra.mxu1 %v4504_v61 }
  0xd1   :  { %1956 = vmatprep.subr.bf16.mxu1 %v5430_v1 }
  0xd4   :  { %1957 = vmatpush1.bf16.msra.mxu1 %v4520_v3 }
  0xd5   :  { %1958 = vmatprep.subr.bf16.mxu1 %v5430_v1 }
  0xd8   :  { %1959 = vmatpush1.bf16.msra.mxu1 %v4540_v9 }
  0xd9   :  { %2049 = vmatprep.subr.bf16.mxu1 %v5430_v1 }
  0xdd   :  { %v4390_v20 = vpop.f32.mrb[0].mxu1 }
  0xde   :  { %v4392_v21 = vpop.f32.mrb[1].mxu1 }
  0xdf   :  { %v4394_v22 = vpop.f32.mrb[2].mxu1 }
  0xe0   :  { %v4396_v24 = vpop.f32.mrb[3].mxu1 }
 0x115   :  { %v4509_v62 = vpop.f32.mrb[0].mxu0 }
 0x116   :  { %v4522_v4 = vpop.f32.mrb[1].mxu0 }
 0x117   :  { %v4524_v6 = vpop.f32.mrb[2].mxu0 }
 0x118   :  { %v4527_v7 = vpop.f32.mrb[3].mxu0 }
 0x11d   :  { %v4545_v10 = vpop.f32.mrb[4].mxu0 }
 0x11e   :  { %v4548_v11 = vpop.f32.mrb[5].mxu0 }
 0x11f   :  { %v4550_v16 = vpop.f32.mrb[6].mxu0 }
 0x120   :  { %v4552_v17 = vpop.f32.mrb[7].mxu0 }
 0x125   :  { %v4554_v18 = vpop.f32.mrb[8].mxu0  ;;  %v4556_v19 = vpop.f32.mrb[4].mxu1 }
 0x126   :  { %v4560_v25 = vpop.f32.mrb[9].mxu0  ;;  %v4562_v26 = vpop.f32.mrb[5].mxu1  ;;  %v5462_v49 = vmax.f32 %v4509_v62, %v4556_v19 }
 0x127   :  { %v4566_v28 = vpop.f32.mrb[10].mxu0  ;;  %v4568_v30 = vpop.f32.mrb[6].mxu1 }
 0x128   :  { %v4572_v12 = vpop.f32.mrb[11].mxu0  ;;  %v4574_v35 = vpop.f32.mrb[7].mxu1 }
 0x129   :  { %v5465_v62 = vmax.f32 %v4527_v7, %v4574_v35 }
 0x12d   :  { %v462_v37 = vpop.f32.mrb[12].mxu0  ;;  %v4578_v40 = vpop.f32.mrb[8].mxu1 }
 0x12e   :  { %v4581_v41 = vadd.f32 %v462_v37, %v4390_v20  ;;  %v464_v46 = vpop.f32.mrb[13].mxu0  ;;  %v4585_v47 = vpop.f32.mrb[9].mxu1 }
 0x12f   :  { %v4588_v48 = vadd.f32 %v464_v46, %v4392_v21  ;;  %v466_v54 = vpop.f32.mrb[14].mxu0  ;;  %v4592_v55 = vpop.f32.mrb[10].mxu1 }
 0x130   :  { %v4595_v56 = vadd.f32 %v466_v54, %v4394_v22  ;;  %v468_v15 = vpop.f32.mrb[15].mxu0  ;;  %v4599_v53 = vpop.f32.mrb[11].mxu1  ;;  %v1325_v54 = vlaneseq  ;;  %v1323_v22 = vld [vmem:[%s5423_s2] sm:$0x3] }
 0x131   :  { %v4602_v2 = vadd.f32 %v468_v15, %v4396_v24 }
 0x132   :  { %v1326_v0 = vshrl.u32 %v1325_v54, 7 }
 0x134   :  { %v1327_v9 = vsub.s32 0, %v1326_v0  ;;  %v1331_v8 = vsub.s32 1, %v1326_v0  ;;  %v5463_v0 = vmax.f32 %v4522_v4, %v4562_v26 }
 0x135   :  { %v4606_v58 = vpop.f32.mrb[12].mxu1 }
 0x136   :  { %v4610_v27 = vpop.f32.mrb[13].mxu1  ;;  %v4641_v37 = vrot.slane %v1323_v22, %v1327_v9  ;;  %v4643_v52 = vrot.slane %v1323_v22, %v1331_v8 }
 0x137   :  { %v4614_v21 = vpop.f32.mrb[14].mxu1 }
 0x138   :  { %v4618_v24 = vpop.f32.mrb[15].mxu1 }
 0x13d   :  { %v4622_v46 = vpop.f32.mrb[16].mxu1 }
 0x13e   :  { %v4626_v15 = vpop.f32.mrb[17].mxu1 }
 0x13f   :  { %v4630_v20 = vpop.f32.mrb[18].mxu1 }
 0x140   :  { %v4634_v14 = vpop.f32.mrb[19].mxu1 }
 0x175   :  { %v1001_v5 = vpop.f32.mrb[16].mxu0 }
 0x176   :  { %v1003_v13 = vpop.f32.mrb[17].mxu0 }
 0x177   :  { %v1005_v51 = vpop.f32.mrb[18].mxu0 }
 0x178   :  { %v1007_v42 = vpop.f32.mrb[19].mxu0 }
 0x17d   :  { %v1011_v36 = vpop.f32.mrb[20].mxu0 }
 0x17e   :  { %v1013_v31 = vpop.f32.mrb[21].mxu0 }
 0x17f   :  { %v1015_v23 = vpop.f32.mrb[22].mxu0 }
 0x180   :  { %v1017_v1 = vpop.f32.mrb[23].mxu0 }
 0x185   :  { %v1021_v3 = vpop.f32.mrb[24].mxu0  ;;  %v1236_v63 = vpop.f32.mrb[20].mxu1 }
 0x186   :  { %v1291_v61 = vmax.f32 %v1001_v5, %v1236_v63  ;;  %v1023_v60 = vpop.f32.mrb[25].mxu0  ;;  %v1238_v59 = vpop.f32.mrb[21].mxu1 }
 0x187   :  { %v1292_v57 = vmax.f32 %v1003_v13, %v1238_v59  ;;  %v1025_v50 = vpop.f32.mrb[26].mxu0  ;;  %v1240_v54 = vpop.f32.mrb[22].mxu1  ;;  %v5464_v59 = vmax.f32 %v4524_v6, %v4568_v30 }
 0x188   :  { %v1307_v45 = vmax.f32 %v5462_v49, %v1291_v61  ;;  %v1293_v44 = vmax.f32 %v1005_v51, %v1240_v54  ;;  %v1027_v43 = vpop.f32.mrb[27].mxu0  ;;  %v1242_v39 = vpop.f32.mrb[23].mxu1  ;;  %v5466_v54 = vmax.f32 %v4545_v10, %v4578_v40 }
 0x189   :  { %v1308_v63 = vmax.f32 %v5463_v0, %v1292_v57  ;;  %v1294_v9 = vmax.f32 %v1007_v42, %v1242_v39 }
 0x18a   :  { %v1335_v5 = vadd.f32 %v4641_v37, %v1307_v45  ;;  %v1309_v8 = vmax.f32 %v5464_v59, %v1293_v44  ;;  %v5467_v59 = vmax.f32 %v4548_v11, %v4585_v47 }
 0x18b   :  { %v1336_v13 = vadd.f32 %v4643_v52, %v1308_v63  ;;  %v1310_v49 = vmax.f32 %v5465_v62, %v1294_v9  ;;  %v5468_v62 = vmax.f32 %v4550_v16, %v4592_v55 }
 0x18c   :  { %v1337_v61 = vadd.f32 %v4641_v37, %v1309_v8  ;;  %v1351_v39 = vmax.f32 %v1335_v5, 0.0 }
 0x18d   :  { %v1338_v19 = vadd.f32 %v4643_v52, %v1310_v49  ;;  %v4661_v51 = vpop.f32.mrb[28].mxu0  ;;  %v1246_v57 = vpop.f32.mrb[24].mxu1  ;;  %v1352_v44 = vmax.f32 %v1336_v13, 0.0 }
 0x18e   :  { %v1353_v4 = vmax.f32 %v1337_v61, 0.0  ;;  %v1295_v45 = vmax.f32 %v1011_v36, %v1246_v57  ;;  %v4663_v26 = vpop.f32.mrb[29].mxu0  ;;  %v1248_v6 = vpop.f32.mrb[25].mxu1 }
 0x18f   :  { %v1354_v30 = vmax.f32 %v1338_v19, 0.0  ;;  %v1296_v42 = vmax.f32 %v1013_v31, %v1248_v6  ;;  %v4665_v22 = vpop.f32.mrb[30].mxu0  ;;  %v1250_v7 = vpop.f32.mrb[26].mxu1 }
 0x190   :  { %v4667_v35 = vpack.c.bf16 %v1353_v4, %v1351_v39  ;;  %v1311_v0 = vmax.f32 %v5466_v54, %v1295_v45  ;;  %v1297_v63 = vmax.f32 %v1015_v23, %v1250_v7  ;;  %v4672_v9 = vpop.f32.mrb[31].mxu0  ;;  %v1252_v5 = vpop.f32.mrb[27].mxu1  ;;  %v5469_v23 = vmax.f32 %v4552_v17, %v4599_v53 }
 0x191   :  { %v4674_v36 = vpack.c.bf16 %v1354_v30, %v1352_v44  ;;  %v1312_v8 = vmax.f32 %v5467_v59, %v1296_v42  ;;  %v1298_v31 = vmax.f32 %v1017_v1, %v1252_v5  ;;  %v5470_v17 = vmax.f32 %v4554_v18, %v4606_v58 }
 0x192   :  { %v1339_v13 = vadd.f32 %v4641_v37, %v1311_v0  ;;  %v1313_v49 = vmax.f32 %v5468_v62, %v1297_v63  ;;  %v1406_v42 = vrot.slane %v4667_v35, 4  ;;  %v5472_v5 = vmax.f32 %v4566_v28, %v4614_v21  ;;  %v4723_v21 = vld [vmem:[%s5422_s3] sm:$0xff]  }
 0x193   :  { %v1340_v10 = vadd.f32 %v4643_v52, %v1312_v8  ;;  %v1314_v40 = vmax.f32 %v5469_v23, %v1298_v31 }
 0x194   :  { %v1341_v61 = vadd.f32 %v4641_v37, %v1313_v49  ;;  %v1355_v11 = vmax.f32 %v1339_v13, 0.0 }
 0x195   :  { %v1342_v19 = vadd.f32 %v4643_v52, %v1314_v40  ;;  %v1256_v57 = vpop.f32.mrb[28].mxu1  ;;  %v1356_v4 = vmax.f32 %v1340_v10, 0.0 }
 0x196   :  { %v1357_v47 = vmax.f32 %v1341_v61, 0.0  ;;  %v1299_v1 = vmax.f32 %v1021_v3, %v1256_v57  ;;  %v1258_v39 = vpop.f32.mrb[29].mxu1  ;;  %v5471_v3 = vmax.f32 %v4560_v25, %v4610_v27  ;;  %v5473_v25 = vmax.f32 %v4572_v12, %v4618_v24  ;;  %v4728_v12 = vld [vmem:[%s5422_s3 + $0x50] sm:$0xff]  }
 0x197   :  { %v1358_v45 = vmax.f32 %v1342_v19, 0.0  ;;  %v1300_v6 = vmax.f32 %v1023_v60, %v1258_v39  ;;  %v1260_v16 = vpop.f32.mrb[30].mxu1  ;;  %v1407_v60 = vrot.slane %v4674_v36, 4 }
 0x198   :  { %v4689_v55 = vpack.c.bf16 %v1357_v47, %v1355_v11  ;;  %v1315_v53 = vmax.f32 %v5470_v17, %v1299_v1  ;;  %v1301_v44 = vmax.f32 %v1025_v50, %v1260_v16  ;;  %v1262_v30 = vpop.f32.mrb[31].mxu1  ;;  %v5476_v16 = vmov 0  }
 0x199   :  { %v1370_v7 = vpack.c.bf16 %v1358_v45, %v1356_v4  ;;  %v1316_v54 = vmax.f32 %v5471_v3, %v1300_v6  ;;  %v1302_v0 = vmax.f32 %v1027_v43, %v1262_v30  ;;  %v4759_v45 = vld [vmem:[%s5422_s3 + $0x58] sm:$0xff]  }
 0x19a   :  { %v1343_v63 = vadd.f32 %v4641_v37, %v1315_v53  ;;  %v1317_v59 = vmax.f32 %v5472_v5, %v1301_v44  ;;  %v1377_v18 = vrot.slane %v4689_v55, 4  ;;  %v4706_v50 = vsel %vm79_vm1, %v1406_v42, %v4689_v55 }
 0x19b   :  { %v1344_v58 = vadd.f32 %v4643_v52, %v1316_v54  ;;  %v1318_v43 = vmax.f32 %v5473_v25, %v1302_v0  ;;  %v1378_v27 = vrot.slane %v1370_v7, 4  ;;  %v4713_v8 = vsel %vm79_vm1, %v1407_v60, %v1370_v7 }
 0x19c   :  { %v1345_v31 = vadd.f32 %v4641_v37, %v1317_v59  ;;  %v4718_v28 = vsel %vm79_vm1, %v4667_v35, %v1377_v18  ;;  %v1359_v49 = vmax.f32 %v1343_v63, 0.0  ;;  %v5477_v53 = vmax.f32 %v4595_v56, %v4630_v20  ;;  %v4789_v56 = vld [vmem:[%s5422_s3 + $0x10] sm:$0xff]  }
 0x19d   :  { %v1346_v24 = vadd.f32 %v4643_v52, %v1318_v43  ;;  %v1266_v13 = vpop.f32.mrb[32].mxu1  ;;  %v4733_v62 = vsel %vm79_vm1, %v4674_v36, %v1378_v27  ;;  %v1360_v61 = vmax.f32 %v1344_v58, 0.0 }
 0x19e   :  { %v1361_v10 = vmax.f32 %v1345_v31, 0.0  ;;  %v1303_v23 = vmax.f32 %v4661_v51, %v1266_v13  ;;  %v1268_v40 = vpop.f32.mrb[33].mxu1  ;;  %3222 = vmatprep.mubr.msk.bf16.mxu0 %vm1533_vm3, %v4733_v62  ;;  %3320 = vmatprep.mubr.msk.bf16.mxu1 %vm1533_vm3, %v4733_v62  ;;  %v5474_v51 = vmax.f32 %v4581_v41, %v4622_v46  ;;  %v5475_v41 = vmax.f32 %v4588_v48, %v4626_v15  ;;  %v4842_v31 = vld [vmem:[%s5422_s3 + $0x70] sm:$0xff]  }
 0x19f   :  { %v1362_v19 = vmax.f32 %v1346_v24, 0.0  ;;  %v1304_v57 = vmax.f32 %v4663_v26, %v1268_v40  ;;  %v1270_v11 = vpop.f32.mrb[34].mxu1  ;;  %1571 = vmatmul.mubr.bf16.vlgmr.msra.gmra.mrb[32].mxu0 %v4718_v28  ;;  %1973 = vmatmul.mubr.bf16.vlgmr.msra.gmra.mrb[36].mxu1 %v4718_v28  ;;  %v4754_v26 = vld [vmem:[%s5422_s3 + $0x8] sm:$0xff]   ;;  %v5478_v15 = vmax.f32 %v4602_v2, %v4634_v14  ;;  %v4794_v2 = vld [vmem:[%s5422_s3 + $0x60] sm:$0xff]  }
 0x1a0   :  { %v4743_v47 = vpack.c.bf16 %v1361_v10, %v1359_v49  ;;  %v1319_v1 = vmax.f32 %v5474_v51, %v1303_v23  ;;  %v1305_v39 = vmax.f32 %v4665_v22, %v1270_v11  ;;  %1652 = vmatpush1.bf16.msra.mxu0 %v4723_v21  ;;  %2050 = vmatpush1.bf16.msra.mxu1 %v4728_v12  ;;  %v1272_v4 = vpop.f32.mrb[35].mxu1  ;;  %v1384_v49 = vsel %vm79_vm1, 0, %v4674_v36  ;;  %v4866_v10 = vld [vmem:[%s5422_s3 + $0x28] sm:$0xff]   ;;  %v4871_v23 = vld [vmem:[%s5422_s3 + $0x78] sm:$0xff]   ;;  %v4882_v36 = vld [vmem:[%s5422_s3 + $0x30] sm:$0xff]  }
 0x1a1   :  { %v1372_v6 = vpack.c.bf16 %v1362_v19, %v1360_v61  ;;  %v1320_v46 = vmax.f32 %v5475_v41, %v1304_v57  ;;  %v1306_v22 = vmax.f32 %v4672_v9, %v1272_v4  ;;  %1653 = vmatprep.subr.bf16.mxu0 %v5476_v16  ;;  %2051 = vmatprep.subr.bf16.mxu1 %v5476_v16  ;;  %v4887_v40 = vld [vmem:[%s5422_s3 + $0x80] sm:$0xff]   ;;  %v4896_v61 = vld [vmem:[%s5422_s3 + $0x38] sm:$0xff]   ;;  %v4901_v19 = vld [vmem:[%s5422_s3 + $0x88] sm:$0xff]  }
 0x1a2   :  { %v1347_v17 = vadd.f32 %v4641_v37, %v1319_v1  ;;  %v1321_v44 = vmax.f32 %v5477_v53, %v1305_v39  ;;  %v4773_v30 = vsel %vm79_vm1, %v1377_v18, %v4743_v47  ;;  %v1410_v42 = vrot.slane %v4743_v47, 4  ;;  %v4910_v57 = vld [vmem:[%s5422_s3 + $0x40] sm:$0xff]   ;;  %v4915_v11 = vld [vmem:[%s5422_s3 + $0x90] sm:$0xff]   ;;  %v4924_v51 = vld [vmem:[%s5422_s3 + $0x48] sm:$0xff]  }
 0x1a3   :  { %v1348_v48 = vadd.f32 %v4643_v52, %v1320_v46  ;;  %v1322_v9 = vmax.f32 %v5478_v15, %v1306_v22  ;;  %v4781_v3 = vsel %vm79_vm1, %v1378_v27, %v1372_v6  ;;  %v1411_v54 = vrot.slane %v1372_v6, 4  ;;  %v4837_v27 = vld [vmem:[%s5422_s3 + $0x20] sm:$0xff]   ;;  %v4929_v1 = vld [vmem:[%s5422_s3 + $0x98] sm:$0xff]   ;;  %v4946_v4 = vld [vmem:[%s5422_s3 + $0x190] sm:$0xff]  }
 0x1a4   :  { %v1349_v0 = vadd.f32 %v4641_v37, %v1321_v44  ;;  %1654 = vmatpush1.bf16.msra.mxu0 %v4754_v26  ;;  %2052 = vmatpush1.bf16.msra.mxu1 %v4759_v45  ;;  %v4800_v14 = vsel %vm79_vm1, %v4689_v55, %v1410_v42  ;;  %v1363_v60 = vmax.f32 %v1347_v17, 0.0  ;;  %v4820_v55 = vld [vmem:[%s5422_s3 + $0x68] sm:$0xff]   ;;  %v4939_v39 = vld [vmem:[%s5422_s3 + $0x140] sm:$0xff]   ;;  %v4964_v41 = vld [vmem:[%s5422_s3 + $0x198] sm:$0xff]  }
 0x1a5   :  { %v1350_v20 = vadd.f32 %v4643_v52, %v1322_v9  ;;  %1655 = vmatprep.subr.bf16.mxu0 %v5476_v16  ;;  %2053 = vmatprep.subr.bf16.mxu1 %v5476_v16  ;;  %v4806_v37 = vsel %vm79_vm1, %v1370_v7, %v1411_v54  ;;  %v1364_v5 = vmax.f32 %v1348_v48, 0.0  ;;  %v4815_v52 = vld [vmem:[%s5422_s3 + $0x18] sm:$0xff]   ;;  %v4979_v46 = vld [vmem:[%s5422_s3 + $0x1a0] sm:$0xff]   ;;  %v4998_v17 = vld [vmem:[%s5422_s3 + $0x1a8] sm:$0xff]  }
 0x1a6   :  { %v1365_v63 = vmax.f32 %v1349_v0, 0.0  ;;  %v4990_v22 = vld [vmem:[%s5422_s3 + $0x158] sm:$0xff]   ;;  %v5006_v53 = vld [vmem:[%s5422_s3 + $0x160] sm:$0xff]   ;;  %v5013_v44 = vld [vmem:[%s5422_s3 + $0x1b0] sm:$0xff]  }
 0x1a7   :  { %v1366_v59 = vmax.f32 %v1350_v20, 0.0  ;;  %v5027_v48 = vld [vmem:[%s5422_s3 + $0x1b8] sm:$0xff]   ;;  %v5034_v15 = vld [vmem:[%s5422_s3 + $0x170] sm:$0xff]   ;;  %v5041_v9 = vld [vmem:[%s5422_s3 + $0x1c0] sm:$0xff]  }
 0x1a8   :  { %v4808_v18 = vpack.c.bf16 %v1365_v63, %v1363_v60  ;;  %1656 = vmatpush1.bf16.msra.mxu0 %v4789_v56  ;;  %2054 = vmatpush1.bf16.msra.mxu1 %v4794_v2  ;;  %v5062_v0 = vld [vmem:[%s5422_s3 + $0x180] sm:$0xff]   ;;  %v5069_v20 = vld [vmem:[%s5422_s3 + $0x1d0] sm:$0xff]   ;;  %v5076_v60 = vld [vmem:[%s5422_s3 + $0x188] sm:$0xff]  }
 0x1a9   :  { %v4822_v7 = vpack.c.bf16 %v1366_v59, %v1364_v5  ;;  %1657 = vmatprep.subr.bf16.mxu0 %v5476_v16  ;;  %2055 = vmatprep.subr.bf16.mxu1 %v5476_v16  ;;  %v5083_v63 = vld [vmem:[%s5422_s3 + $0x1d8] sm:$0xff]   ;;  %v5487_v59 = vld [vmem:[#allocation11_spill] sm:$0xff] }
 0x1aa   :  { %v1394_v58 = vrot.slane %v4808_v18, 4  ;;  %v1421_v5 = vsel %vm79_vm1, %v1410_v42, %v4808_v18  ;;  %v5486_v42 = vld [vmem:[#allocation10_spill] sm:$0xff] }
 0x1ab   :  { %v1395_v25 = vrot.slane %v4822_v7, 4  ;;  %v4830_v43 = vsel %vm79_vm1, %v1411_v54, %v4822_v7  ;;  %v5055_v54 = vld [vmem:[%s5422_s3 + $0x1c8] sm:$0xff]  }
 0x1ac   :  { %1658 = vmatpush1.bf16.msra.mxu0 %v4815_v52  ;;  %2056 = vmatpush1.bf16.msra.mxu1 %v4820_v55  ;;  %v4855_v13 = vsel %vm79_vm1, %v4743_v47, %v1394_v58  ;;  %v5485_v47 = vld [vmem:[#allocation9_spill] sm:$0xff]  ;;  %v5488_v58 = vld [vmem:[#allocation12_spill] sm:$0xff] }
 0x1ad   :  { %v4845_v24 = vsel %vm79_vm1, %v1372_v6, %v1395_v25  ;;  %1659 = vmatprep.subr.bf16.mxu0 %v5476_v16  ;;  %2057 = vmatprep.subr.bf16.mxu1 %v5476_v16  ;;  %v4956_v6 = vld [vmem:[%s5422_s3 + $0x148] sm:$0xff]   ;;  %v5489_v25 = vld [vmem:[#allocation13_spill] sm:$0xff] }
 0x1ae   :  { %3223 = vmatprep.mubr.msk.bf16.mxu0 %vm1533_vm3, %v4845_v24  ;;  %3321 = vmatprep.mubr.msk.bf16.mxu1 %vm1533_vm3, %v4845_v24 }
 0x1af   :  { %1579 = vmatmul.mubr.bf16.gmra.mrb[36].mxu0 %v4855_v13  ;;  %1981 = vmatmul.mubr.bf16.gmra.mrb[40].mxu1 %v4855_v13 }
 0x1b0   :  { %1660 = vmatpush1.bf16.msra.mxu0 %v4837_v27  ;;  %2058 = vmatpush1.bf16.msra.mxu1 %v4842_v31 }
 0x1b1   :  { %3234 = vmatprep.mubr.msk.bf16.mxu0 %vm1533_vm3, %v1384_v49  ;;  %3332 = vmatprep.mubr.msk.bf16.mxu1 %vm1533_vm3, %v1384_v49  ;;  %v5490_v49 = vld [vmem:[#allocation14_spill] sm:$0xff] }
 0x1b2   :  { %1661 = vmatprep.subr.bf16.mxu0 %v5476_v16  ;;  %2059 = vmatprep.subr.bf16.mxu1 %v5476_v16 }
 0x1b4   :  { %1662 = vmatpush1.bf16.msra.mxu0 %v4866_v10  ;;  %2060 = vmatpush1.bf16.msra.mxu1 %v4871_v23 }
 0x1b5   :  { %1663 = vmatprep.subr.bf16.mxu0 %v5476_v16  ;;  %2061 = vmatprep.subr.bf16.mxu1 %v5476_v16 }
 0x1b8   :  { %1664 = vmatpush1.bf16.msra.mxu0 %v4882_v36  ;;  %2062 = vmatpush1.bf16.msra.mxu1 %v4887_v40 }
 0x1b9   :  { %1665 = vmatprep.subr.bf16.mxu0 %v5476_v16  ;;  %2063 = vmatprep.subr.bf16.mxu1 %v5476_v16 }
 0x1bc   :  { %1666 = vmatpush1.bf16.msra.mxu0 %v4896_v61  ;;  %2064 = vmatpush1.bf16.msra.mxu1 %v4901_v19 }
 0x1bd   :  { %1667 = vmatprep.subr.bf16.mxu0 %v5476_v16  ;;  %2065 = vmatprep.subr.bf16.mxu1 %v5476_v16 }
 0x1c0   :  { %1668 = vmatpush1.bf16.msra.mxu0 %v4910_v57  ;;  %2066 = vmatpush1.bf16.msra.mxu1 %v4915_v11 }
 0x1c1   :  { %1669 = vmatprep.subr.bf16.mxu0 %v5476_v16  ;;  %2067 = vmatprep.subr.bf16.mxu1 %v5476_v16 }
 0x1c4   :  { %1670 = vmatpush1.bf16.msra.mxu0 %v4924_v51  ;;  %2068 = vmatpush1.bf16.msra.mxu1 %v4929_v1 }
 0x1c5   :  { %1785 = vmatprep.subr.bf16.mxu0 %v5476_v16  ;;  %2179 = vmatprep.subr.bf16.mxu1 %v5476_v16 }
 0x1c7   :  { %3236 = vmatmul.mubr.msk.bf16.vlgmr.msra.gmra.mrb[32].mxu0 %vm3235_vm4, %v4667_v35  ;;  %3334 = vmatmul.mubr.msk.bf16.vlgmr.msra.gmra.mrb[36].mxu1 %vm3235_vm4, %v4667_v35  ;;  %v4972_v35 = vld [vmem:[%s5422_s3 + $0x150] sm:$0xff]  }
 0x1c8   :  { %3237 = vmatprep.mubr.msk.bf16.mxu0 %vm1533_vm3, %v4781_v3  ;;  %1786 = vmatpush1.bf16.msra.mxu0 %v4939_v39 }
 0x1c9   :  { %3335 = vmatprep.mubr.msk.bf16.mxu1 %vm1533_vm3, %v4781_v3  ;;  %2180 = vmatpush1.bf16.msra.mxu1 %v4946_v4  ;;  %v5048_v3 = vld [vmem:[%s5422_s3 + $0x178] sm:$0xff]  }
 0x1ca   :  { %1787 = vmatprep.subr.bf16.mxu0 %v5476_v16  ;;  %2181 = vmatprep.subr.bf16.mxu1 %v5476_v16 }
 0x1cc   :  { %1788 = vmatpush1.bf16.msra.mxu0 %v4956_v6 }
 0x1cd   :  { %2182 = vmatpush1.bf16.msra.mxu1 %v4964_v41  ;;  %1789 = vmatprep.subr.bf16.mxu0 %v5476_v16 }
 0x1ce   :  { %2183 = vmatprep.subr.bf16.mxu1 %v5476_v16 }
 0x1cf   :  { %1692 = vmatmul.mubr.bf16.gmra.mrb[36].mxu0 %v4773_v30  ;;  %2090 = vmatmul.mubr.bf16.gmra.mrb[40].mxu1 %v4773_v30  ;;  %v5020_v30 = vld [vmem:[%s5422_s3 + $0x168] sm:$0xff]  }
 0x1d0   :  { %1790 = vmatpush1.bf16.msra.mxu0 %v4972_v35  ;;  %3268 = vmatprep.mubr.msk.bf16.mxu0 %vm1533_vm3, %v4713_v8 }
 0x1d1   :  { %2184 = vmatpush1.bf16.msra.mxu1 %v4979_v46  ;;  %3366 = vmatprep.mubr.msk.bf16.mxu1 %vm1533_vm3, %v4713_v8 }
 0x1d2   :  { %1791 = vmatprep.subr.bf16.mxu0 %v5476_v16  ;;  %2185 = vmatprep.subr.bf16.mxu1 %v5476_v16 }
 0x1d4   :  { %1792 = vmatpush1.bf16.msra.mxu0 %v4990_v22 }
 0x1d5   :  { %2186 = vmatpush1.bf16.msra.mxu1 %v4998_v17  ;;  %1793 = vmatprep.subr.bf16.mxu0 %v5476_v16 }
 0x1d6   :  { %2187 = vmatprep.subr.bf16.mxu1 %v5476_v16 }
 0x1d8   :  { %1794 = vmatpush1.bf16.msra.mxu0 %v5006_v53 }
 0x1d9   :  { %2188 = vmatpush1.bf16.msra.mxu1 %v5013_v44  ;;  %1795 = vmatprep.subr.bf16.mxu0 %v5476_v16 }
 0x1da   :  { %2189 = vmatprep.subr.bf16.mxu1 %v5476_v16 }
 0x1dc   :  { %1796 = vmatpush1.bf16.msra.mxu0 %v5020_v30 }
 0x1dd   :  { %2190 = vmatpush1.bf16.msra.mxu1 %v5027_v48  ;;  %1797 = vmatprep.subr.bf16.mxu0 %v5476_v16 }
 0x1de   :  { %2191 = vmatprep.subr.bf16.mxu1 %v5476_v16 }
 0x1e0   :  { %1798 = vmatpush1.bf16.msra.mxu0 %v5034_v15 }
 0x1e1   :  { %2192 = vmatpush1.bf16.msra.mxu1 %v5041_v9  ;;  %1799 = vmatprep.subr.bf16.mxu0 %v5476_v16 }
 0x1e2   :  { %2193 = vmatprep.subr.bf16.mxu1 %v5476_v16 }
 0x1e4   :  { %1800 = vmatpush1.bf16.msra.mxu0 %v5048_v3 }
 0x1e5   :  { %2194 = vmatpush1.bf16.msra.mxu1 %v5055_v54  ;;  %1801 = vmatprep.subr.bf16.mxu0 %v5476_v16 }
 0x1e6   :  { %2195 = vmatprep.subr.bf16.mxu1 %v5476_v16 }
 0x1e8   :  { %1802 = vmatpush1.bf16.msra.mxu0 %v5062_v0 }
 0x1e9   :  { %2196 = vmatpush1.bf16.msra.mxu1 %v5069_v20  ;;  %1803 = vmatprep.subr.bf16.mxu0 %v5476_v16 }
 0x1ea   :  { %2197 = vmatprep.subr.bf16.mxu1 %v5476_v16 }
 0x1ec   :  { %1804 = vmatpush1.bf16.msra.mxu0 %v5076_v60 }
 0x1ed   :  { %2198 = vmatpush1.bf16.msra.mxu1 %v5083_v63  ;;  %2236 = vmatprep.subr.bf16.mxu0 %v5476_v16 }
 0x1ee   :  { %2391 = vmatprep.subr.bf16.mxu1 %v5476_v16 }
 0x1ef   :  { %1818 = vmatmul.mubr.bf16.vlgmr.msra.gmra.mrb[32].mxu0 %v4706_v50 }
 0x1f0   :  { %2212 = vmatmul.mubr.bf16.vlgmr.msra.gmra.mrb[36].mxu1 %v4706_v50  ;;  %3269 = vmatprep.mubr.msk.bf16.mxu0 %vm1533_vm3, %v4830_v43 }
 0x1f1   :  { %3367 = vmatprep.mubr.msk.bf16.mxu1 %vm1533_vm3, %v4830_v43  ;;  %2237 = vmatpush1.bf16.msra.mxu0 %v4401_v29  ;;  %v5479_v29 = vld [vmem:[#allocation3_spill] sm:$0xff] }
 0x1f2   :  { %2392 = vmatpush1.bf16.msra.mxu1 %v4406_v32  ;;  %2238 = vmatprep.subr.bf16.mxu0 %v5476_v16  ;;  %v5480_v32 = vld [vmem:[#allocation4_spill] sm:$0xff] }
 0x1f3   :  { %2393 = vmatprep.subr.bf16.mxu1 %v5476_v16 }
 0x1f5   :  { %2239 = vmatpush1.bf16.msra.mxu0 %v4414_v33  ;;  %v5481_v33 = vld [vmem:[#allocation5_spill] sm:$0xff] }
 0x1f6   :  { %2394 = vmatpush1.bf16.msra.mxu1 %v4419_v34  ;;  %2240 = vmatprep.subr.bf16.mxu0 %v5476_v16  ;;  %v5482_v34 = vld [vmem:[#allocation6_spill] sm:$0xff] }
 0x1f7   :  { %1826 = vmatmul.mubr.bf16.gmra.mrb[36].mxu0 %v1421_v5  ;;  %2395 = vmatprep.subr.bf16.mxu1 %v5476_v16 }
 0x1f8   :  { %2220 = vmatmul.mubr.bf16.gmra.mrb[40].mxu1 %v1421_v5  ;;  %3368 = vmatprep.mubr.msk.bf16.mxu0 %vm1533_vm3, %v4713_v8 }
 0x1f9   :  { %2241 = vmatpush1.bf16.msra.mxu0 %v4429_v38  ;;  %3375 = vmatprep.mubr.msk.bf16.mxu1 %vm1533_vm3, %v4713_v8  ;;  %v5483_v38 = vld [vmem:[#allocation7_spill] sm:$0xff]  ;;  %v5484_v8 = vld [vmem:[#allocation8_spill] sm:$0xff] }
 0x1fa   :  { %2396 = vmatpush1.bf16.msra.mxu1 %v5479_v29  ;;  %2242 = vmatprep.subr.bf16.mxu0 %v5476_v16  ;;  %v5491_v29 = vld [vmem:[#allocation15_spill] sm:$0xff] }
 0x1fb   :  { %2397 = vmatprep.subr.bf16.mxu1 %v5476_v16 }
 0x1fd   :  { %2243 = vmatpush1.bf16.msra.mxu0 %v5480_v32  ;;  %v5492_v32 = vld [vmem:[#allocation16_spill] sm:$0xff] }
 0x1fe   :  { %2398 = vmatpush1.bf16.msra.mxu1 %v5481_v33  ;;  %2244 = vmatprep.subr.bf16.mxu0 %v5476_v16  ;;  %v5493_v33 = vld [vmem:[#allocation17_spill] sm:$0xff] }
 0x1ff   :  { %2399 = vmatprep.subr.bf16.mxu1 %v5476_v16 }
 0x201   :  { %2245 = vmatpush1.bf16.msra.mxu0 %v5482_v34 }
 0x202   :  { %2400 = vmatpush1.bf16.msra.mxu1 %v5483_v38  ;;  %2246 = vmatprep.subr.bf16.mxu0 %v5476_v16 }
 0x203   :  { %2401 = vmatprep.subr.bf16.mxu1 %v5476_v16 }
 0x205   :  { %2247 = vmatpush1.bf16.msra.mxu0 %v5484_v8 }
 0x206   :  { %2402 = vmatpush1.bf16.msra.mxu1 %v5485_v47  ;;  %2248 = vmatprep.subr.bf16.mxu0 %v5476_v16 }
 0x207   :  { %2403 = vmatprep.subr.bf16.mxu1 %v5476_v16 }
 0x209   :  { %2249 = vmatpush1.bf16.msra.mxu0 %v5486_v42 }
 0x20a   :  { %2404 = vmatpush1.bf16.msra.mxu1 %v5487_v59  ;;  %2250 = vmatprep.subr.bf16.mxu0 %v5476_v16 }
 0x20b   :  { %2405 = vmatprep.subr.bf16.mxu1 %v5476_v16 }
 0x20d   :  { %2251 = vmatpush1.bf16.msra.mxu0 %v5488_v58 }
 0x20e   :  { %2406 = vmatpush1.bf16.msra.mxu1 %v5489_v25  ;;  %2252 = vmatprep.subr.bf16.mxu0 %v5476_v16 }
 0x20f   :  { %2407 = vmatprep.subr.bf16.mxu1 %v5476_v16 }
 0x211   :  { %2253 = vmatpush1.bf16.msra.mxu0 %v5490_v49 }
 0x212   :  { %2408 = vmatpush1.bf16.msra.mxu1 %v5491_v29  ;;  %2254 = vmatprep.subr.bf16.mxu0 %v5476_v16 }
 0x213   :  { %2409 = vmatprep.subr.bf16.mxu1 %v5476_v16 }
 0x215   :  { %2255 = vmatpush1.bf16.msra.mxu0 %v5492_v32 }
 0x216   :  { %2410 = vmatpush1.bf16.msra.mxu1 %v5493_v33  ;;  %2285 = vmatprep.subr.bf16.mxu0 %v5476_v16  ;;  %v3908_v33 = vld [vmem:[%s5424_s5 + $0xc0] sm:$0xff]  }
 0x217   :  { %2440 = vmatprep.subr.bf16.mxu1 %v5476_v16 }
 0x218   :  { %2269 = vmatmul.mubr.bf16.vlgmr.msra.gmra.mrb[40].mxu0 %v4706_v50 }
 0x219   :  { %2424 = vmatmul.mubr.bf16.vlgmr.msra.gmra.mrb[44].mxu1 %v4706_v50  ;;  %3369 = vmatprep.mubr.msk.bf16.mxu0 %vm1533_vm3, %v4830_v43  ;;  %v3892_v50 = vld [vmem:[%s5424_s5] sm:$0xff]  }
 0x21a   :  { %2286 = vmatpush1.bf16.msra.mxu0 %v4723_v21  ;;  %3376 = vmatprep.mubr.msk.bf16.mxu1 %vm1533_vm3, %v4830_v43  ;;  %v3893_v21 = vld [vmem:[%s5424_s5 + $0x40] sm:$0xff]  }
 0x21b   :  { %2441 = vmatpush1.bf16.msra.mxu1 %v4728_v12  ;;  %2287 = vmatprep.subr.bf16.mxu0 %v5476_v16  ;;  %v1431_v12 = vsel %vm79_vm1, %v4822_v7, 0 }
 0x21c   :  { %2442 = vmatprep.subr.bf16.mxu1 %v5476_v16 }
 0x21e   :  { %2288 = vmatpush1.bf16.msra.mxu0 %v4754_v26  ;;  %v3895_v26 = vld [vmem:[%s5424_s5 + $0x48] sm:$0xff]  }
 0x21f   :  { %2443 = vmatpush1.bf16.msra.mxu1 %v4759_v45  ;;  %2289 = vmatprep.subr.bf16.mxu0 %v5476_v16  ;;  %v3896_v45 = vld [vmem:[%s5424_s5 + $0x10] sm:$0xff]  }
 0x220   :  { %2277 = vmatmul.mubr.bf16.gmra.mrb[44].mxu0 %v1421_v5  ;;  %2444 = vmatprep.subr.bf16.mxu1 %v5476_v16 }
 0x221   :  { %2432 = vmatmul.mubr.bf16.gmra.mrb[48].mxu1 %v1421_v5  ;;  %3370 = vmatprep.mubr.msk.bf16.mxu0 %vm1533_vm3, %v4733_v62 }
 0x222   :  { %2290 = vmatpush1.bf16.msra.mxu0 %v4789_v56  ;;  %3377 = vmatprep.mubr.msk.bf16.mxu1 %vm1533_vm3, %v4733_v62  ;;  %v3894_v62 = vld [vmem:[%s5424_s5 + $0x8] sm:$0xff]   ;;  %v3898_v56 = vld [vmem:[%s5424_s5 + $0x18] sm:$0xff]  }
 0x223   :  { %2445 = vmatpush1.bf16.msra.mxu1 %v4794_v2  ;;  %2291 = vmatprep.subr.bf16.mxu0 %v5476_v16  ;;  %v3899_v2 = vld [vmem:[%s5424_s5 + $0x58] sm:$0xff]  }
 0x224   :  { %2446 = vmatprep.subr.bf16.mxu1 %v5476_v16 }
 0x226   :  { %2292 = vmatpush1.bf16.msra.mxu0 %v4815_v52  ;;  %v3903_v52 = vld [vmem:[%s5424_s5 + $0x68] sm:$0xff]  }
 0x227   :  { %2447 = vmatpush1.bf16.msra.mxu1 %v4820_v55  ;;  %2293 = vmatprep.subr.bf16.mxu0 %v5476_v16  ;;  %v3904_v55 = vld [vmem:[%s5424_s5 + $0x30] sm:$0xff]  }
 0x228   :  { %2448 = vmatprep.subr.bf16.mxu1 %v5476_v16 }
 0x22a   :  { %2294 = vmatpush1.bf16.msra.mxu0 %v4837_v27 }
 0x22b   :  { %2449 = vmatpush1.bf16.msra.mxu1 %v4842_v31  ;;  %2295 = vmatprep.subr.bf16.mxu0 %v5476_v16  ;;  %v3905_v31 = vld [vmem:[%s5424_s5 + $0x70] sm:$0xff]  }
 0x22c   :  { %2450 = vmatprep.subr.bf16.mxu1 %v5476_v16 }
 0x22e   :  { %2296 = vmatpush1.bf16.msra.mxu0 %v4866_v10 }
 0x22f   :  { %2451 = vmatpush1.bf16.msra.mxu1 %v4871_v23  ;;  %2297 = vmatprep.subr.bf16.mxu0 %v5476_v16 }
 0x230   :  { %2452 = vmatprep.subr.bf16.mxu1 %v5476_v16 }
 0x232   :  { %2298 = vmatpush1.bf16.msra.mxu0 %v4882_v36 }
 0x233   :  { %2453 = vmatpush1.bf16.msra.mxu1 %v4887_v40  ;;  %2299 = vmatprep.subr.bf16.mxu0 %v5476_v16  ;;  %v3906_v40 = vld [vmem:[%s5424_s5 + $0x38] sm:$0xff]  }
 0x234   :  { %2454 = vmatprep.subr.bf16.mxu1 %v5476_v16 }
 0x236   :  { %2300 = vmatpush1.bf16.msra.mxu0 %v4896_v61 }
 0x237   :  { %2455 = vmatpush1.bf16.msra.mxu1 %v4901_v19  ;;  %2301 = vmatprep.subr.bf16.mxu0 %v5476_v16 }
 0x238   :  { %2456 = vmatprep.subr.bf16.mxu1 %v5476_v16 }
 0x23a   :  { %2302 = vmatpush1.bf16.msra.mxu0 %v4910_v57  ;;  %v3907_v57 = vld [vmem:[%s5424_s5 + $0x78] sm:$0xff]  }
 0x23b   :  { %2457 = vmatpush1.bf16.msra.mxu1 %v4915_v11  ;;  %2303 = vmatprep.subr.bf16.mxu0 %v5476_v16 }
 0x23c   :  { %2458 = vmatprep.subr.bf16.mxu1 %v5476_v16 }
 0x23e   :  { %2304 = vmatpush1.bf16.msra.mxu0 %v4924_v51 }
 0x23f   :  { %2459 = vmatpush1.bf16.msra.mxu1 %v4929_v1  ;;  %2338 = vmatprep.subr.bf16.mxu0 %v5476_v16 }
 0x240   :  { %2489 = vmatprep.subr.bf16.mxu1 %v5476_v16 }
 0x241   :  { %2318 = vmatmul.mubr.bf16.vlgmr.msra.gmra.mrb[40].mxu0 %v4718_v28 }
 0x242   :  { %2473 = vmatmul.mubr.bf16.vlgmr.msra.gmra.mrb[44].mxu1 %v4718_v28  ;;  %3371 = vmatprep.mubr.msk.bf16.mxu0 %vm1533_vm3, %v4845_v24  ;;  %v3929_v28 = vmov 0.0  }
 0x243   :  { %2339 = vmatpush1.bf16.msra.mxu0 %v4939_v39  ;;  %3378 = vmatprep.mubr.msk.bf16.mxu1 %vm1533_vm3, %v4845_v24 }
 0x244   :  { %2490 = vmatpush1.bf16.msra.mxu1 %v4946_v4  ;;  %2340 = vmatprep.subr.bf16.mxu0 %v5476_v16 }
 0x245   :  { %2491 = vmatprep.subr.bf16.mxu1 %v5476_v16 }
 0x247   :  { %2341 = vmatpush1.bf16.msra.mxu0 %v4956_v6 }
 0x248   :  { %2492 = vmatpush1.bf16.msra.mxu1 %v4964_v41  ;;  %2342 = vmatprep.subr.bf16.mxu0 %v5476_v16 }
 0x249   :  { %2326 = vmatmul.mubr.bf16.gmra.mrb[44].mxu0 %v4855_v13  ;;  %2493 = vmatprep.subr.bf16.mxu1 %v5476_v16 }
 0x24a   :  { %2481 = vmatmul.mubr.bf16.gmra.mrb[48].mxu1 %v4855_v13  ;;  %3372 = vmatprep.mubr.msk.bf16.mxu0 %vm1533_vm3, %v4806_v37 }
 0x24b   :  { %2343 = vmatpush1.bf16.msra.mxu0 %v4972_v35  ;;  %3379 = vmatprep.mubr.msk.bf16.mxu1 %vm1533_vm3, %v4806_v37  ;;  %v3901_v37 = vld [vmem:[%s5424_s5 + $0x60] sm:$0xff]  }
 0x24c   :  { %2494 = vmatpush1.bf16.msra.mxu1 %v4979_v46  ;;  %2344 = vmatprep.subr.bf16.mxu0 %v5476_v16 }
 0x24d   :  { %2495 = vmatprep.subr.bf16.mxu1 %v5476_v16 }
 0x24f   :  { %2345 = vmatpush1.bf16.msra.mxu0 %v4990_v22 }
 0x250   :  { %2496 = vmatpush1.bf16.msra.mxu1 %v4998_v17  ;;  %2346 = vmatprep.subr.bf16.mxu0 %v5476_v16 }
 0x251   :  { %2497 = vmatprep.subr.bf16.mxu1 %v5476_v16 }
 0x253   :  { %2347 = vmatpush1.bf16.msra.mxu0 %v5006_v53 }
 0x254   :  { %2498 = vmatpush1.bf16.msra.mxu1 %v5013_v44  ;;  %2348 = vmatprep.subr.bf16.mxu0 %v5476_v16 }
 0x255   :  { %2499 = vmatprep.subr.bf16.mxu1 %v5476_v16 }
 0x257   :  { %2349 = vmatpush1.bf16.msra.mxu0 %v5020_v30 }
 0x258   :  { %2500 = vmatpush1.bf16.msra.mxu1 %v5027_v48  ;;  %2350 = vmatprep.subr.bf16.mxu0 %v5476_v16 }
 0x259   :  { %2501 = vmatprep.subr.bf16.mxu1 %v5476_v16 }
 0x25b   :  { %2351 = vmatpush1.bf16.msra.mxu0 %v5034_v15 }
 0x25c   :  { %2502 = vmatpush1.bf16.msra.mxu1 %v5041_v9  ;;  %2352 = vmatprep.subr.bf16.mxu0 %v5476_v16  ;;  %v3382_v9 = vld [vmem:[%s5425_s4] ss:$0 sm:$0xff] }
 0x25d   :  { %2503 = vmatprep.subr.bf16.mxu1 %v5476_v16 }
 0x25f   :  { %2353 = vmatpush1.bf16.msra.mxu0 %v5048_v3 }
 0x260   :  { %2504 = vmatpush1.bf16.msra.mxu1 %v5055_v54  ;;  %2354 = vmatprep.subr.bf16.mxu0 %v5476_v16 }
 0x261   :  { %2505 = vmatprep.subr.bf16.mxu1 %v5476_v16 }
 0x263   :  { %2355 = vmatpush1.bf16.msra.mxu0 %v5062_v0 }
 0x264   :  { %2506 = vmatpush1.bf16.msra.mxu1 %v5069_v20  ;;  %2356 = vmatprep.subr.bf16.mxu0 %v5476_v16 }
 0x265   :  { %2507 = vmatprep.subr.bf16.mxu1 %v5476_v16  ;;  %v3897_v16 = vld [vmem:[%s5424_s5 + $0x50] sm:$0xff]  }
 0x267   :  { %2357 = vmatpush1.bf16.msra.mxu0 %v5076_v60 }
 0x268   :  { %2508 = vmatpush1.bf16.msra.mxu1 %v5083_v63  ;;  %3511 = vmatprep.subr.bf16.mxu0 %v3929_v28 }
 0x269   :  { %3531 = vmatprep.subr.bf16.mxu1 %v3929_v28 }
 0x26a   :  { %2371 = vmatmul.mubr.bf16.vlgmr.msra.gmra.mrb[40].mxu0 %v4800_v14 }
 0x26b   :  { %2522 = vmatmul.mubr.bf16.vlgmr.msra.gmra.mrb[44].mxu1 %v4800_v14  ;;  %3373 = vmatprep.mubr.msk.bf16.mxu0 %vm1533_vm3, %v1431_v12  ;;  %v3900_v14 = vld [vmem:[%s5424_s5 + $0x20] sm:$0xff]  }
 0x26c   :  { %3380 = vmatprep.mubr.msk.bf16.mxu1 %vm1533_vm3, %v1431_v12  ;;  %3532 = vmatpush3.bf16.msra.mxu1 %v3892_v50 }
 0x26d   :  { %3512 = vmatpush3.bf16.msra.mxu0 %v3893_v21  ;;  %3533 = vmatprep.subr.bf16.mxu1 %v3929_v28 }
 0x26e   :  { %3513 = vmatprep.subr.bf16.mxu0 %v3929_v28 }
 0x270   :  { %3534 = vmatpush3.bf16.msra.mxu1 %v3894_v62 }
 0x271   :  { %3514 = vmatpush3.bf16.msra.mxu0 %v3895_v26  ;;  %3535 = vmatprep.subr.bf16.mxu1 %v3929_v28  ;;  %v3909_v26 = vld [vmem:[%s5424_s5 + $0x80] sm:$0xff]  }
 0x272   :  { %3374 = vmatmul.mubr.msk.bf16.gmra.mrb[44].mxu0 %vm79_vm1, %v4808_v18  ;;  %3515 = vmatprep.subr.bf16.mxu0 %v3929_v28 }
 0x273   :  { %3381 = vmatmul.mubr.msk.bf16.gmra.mrb[48].mxu1 %vm79_vm1, %v4808_v18  ;;  %v3902_v18 = vld [vmem:[%s5424_s5 + $0x28] sm:$0xff]   ;;  %3527 = vmatprep.mubr.msk.bf16.mxu0 %vm3930_vm5, %v3929_v28 }
 0x274   :  { %3536 = vmatpush3.bf16.msra.mxu1 %v3896_v45  ;;  %3547 = vmatprep.mubr.msk.bf16.mxu1 %vm3930_vm5, %v3929_v28 }
 0x275   :  { %3516 = vmatpush3.bf16.msra.mxu0 %v3897_v16  ;;  %3537 = vmatprep.subr.bf16.mxu1 %v3929_v28 }
 0x276   :  { %3517 = vmatprep.subr.bf16.mxu0 %v3929_v28 }
 0x278   :  { %3538 = vmatpush3.bf16.msra.mxu1 %v3898_v56 }
 0x279   :  { %3518 = vmatpush3.bf16.msra.mxu0 %v3899_v2  ;;  %3539 = vmatprep.subr.bf16.mxu1 %v3929_v28  ;;  %v3910_v2 = vld [vmem:[%s5424_s5 + $0xc8] sm:$0xff]  }
 0x27a   :  { %3519 = vmatprep.subr.bf16.mxu0 %v3929_v28 }
 0x27c   :  { %3540 = vmatpush3.bf16.msra.mxu1 %v3900_v14 }
 0x27d   :  { %3520 = vmatpush3.bf16.msra.mxu0 %v3901_v37  ;;  %3541 = vmatprep.subr.bf16.mxu1 %v3929_v28  ;;  %v3911_v37 = vld [vmem:[%s5424_s5 + $0x88] sm:$0xff]  }
 0x27e   :  { %3521 = vmatprep.subr.bf16.mxu0 %v3929_v28 }
 0x280   :  { %3542 = vmatpush3.bf16.msra.mxu1 %v3902_v18 }
 0x281   :  { %3543 = vmatprep.subr.bf16.mxu1 %v3929_v28  ;;  %3522 = vmatpush3.bf16.msra.mxu0 %v3903_v52 }
 0x282   :  { %3523 = vmatprep.subr.bf16.mxu0 %v3929_v28 }
 0x284   :  { %3544 = vmatpush3.bf16.msra.mxu1 %v3904_v55  ;;  %v3912_v55 = vld [vmem:[%s5424_s5 + $0xd0] sm:$0xff]  }
 0x285   :  { %3545 = vmatprep.subr.bf16.mxu1 %v3929_v28  ;;  %3524 = vmatpush3.bf16.msra.mxu0 %v3905_v31  ;;  %v3915_v31 = vld [vmem:[%s5424_s5 + $0x98] sm:$0xff]  }
 0x286   :  { %3525 = vmatprep.subr.bf16.mxu0 %v3929_v28 }
 0x288   :  { %3546 = vmatpush3.bf16.msra.mxu1 %v3906_v40  ;;  %v3921_v40 = vld [vmem:[%s5424_s5 + $0xb0] sm:$0xff]  }
 0x289   :  { %3571 = vmatprep.subr.bf16.mxu1 %v3929_v28  ;;  %3526 = vmatpush3.bf16.msra.mxu0 %v3907_v57 }
 0x28a   :  { %3551 = vmatprep.subr.bf16.mxu0 %v3929_v28 }
 0x2c2   :  { %v1819_v7 = vpop.f32.mrb[32].mxu0 }
 0x2c3   :  { %v2213_v43 = vpop.f32.mrb[36].mxu1  ;;  %v1821_v27 = vpop.f32.mrb[33].mxu0 }
 0x2c4   :  { %v2232_v24 = vmax.f32 %v1819_v7, %v2213_v43  ;;  %v2215_v13 = vpop.f32.mrb[37].mxu1  ;;  %v1822_v10 = vpop.f32.mrb[34].mxu0  ;;  %v3913_v43 = vld [vmem:[%s5424_s5 + $0x90] sm:$0xff]   ;;  %v3914_v27 = vld [vmem:[%s5424_s5 + $0xd8] sm:$0xff]  }
 0x2c5   :  { %v2216_v23 = vpop.f32.mrb[38].mxu1  ;;  %v1824_v36 = vpop.f32.mrb[35].mxu0  ;;  %v3917_v13 = vld [vmem:[%s5424_s5 + $0xa0] sm:$0xff]  }
 0x2c6   :  { %v2233_v61 = vmax.f32 %v1822_v10, %v2216_v23  ;;  %v2218_v19 = vpop.f32.mrb[39].mxu1  ;;  %v3918_v10 = vld [vmem:[%s5424_s5 + $0xe8] sm:$0xff]   ;;  %v3920_v36 = vld [vmem:[%s5424_s5 + $0xf0] sm:$0xff]  }
 0x2c7   :  { %v3919_v23 = vld [vmem:[%s5424_s5 + $0xa8] sm:$0xff]   ;;  %v3923_v19 = vld [vmem:[%s5424_s5 + $0xb8] sm:$0xff]  }
 0x2ca   :  { %v1827_v11 = vpop.f32.mrb[36].mxu0 }
 0x2cb   :  { %v2221_v51 = vpop.f32.mrb[40].mxu1  ;;  %v1829_v1 = vpop.f32.mrb[37].mxu0 }
 0x2cc   :  { %v2234_v39 = vmax.f32 %v1827_v11, %v2221_v51  ;;  %v2223_v4 = vpop.f32.mrb[41].mxu1  ;;  %v1830_v6 = vpop.f32.mrb[38].mxu0  ;;  %v3924_v11 = vld [vmem:[%s5426_s7] sm:$0xff]   ;;  %v3925_v51 = vld [vmem:[%s5426_s7 + $0x8] sm:$0xff]   ;;  %v3926_v1 = vld [vmem:[%s5426_s7 + $0x10] sm:$0xff]  }
 0x2cd   :  { %v2224_v41 = vpop.f32.mrb[42].mxu1  ;;  %v1832_v35 = vpop.f32.mrb[39].mxu0  ;;  %v14_v4 = vstv %s5427_s8 }
 0x2ce   :  { %v2235_v46 = vmax.f32 %v1830_v6, %v2224_v41  ;;  %v2226_v22 = vpop.f32.mrb[43].mxu1  ;;  %15 = vst [vmem:[#allocation2] sm:$0x1] %v14_v4 }
 0x33d   :  { %v2372_v17 = vpop.f32.mrb[40].mxu0 }
 0x33e   :  { %v2523_v53 = vpop.f32.mrb[44].mxu1  ;;  %v2374_v44 = vpop.f32.mrb[41].mxu0 }
 0x33f   :  { %v2542_v30 = vmax.f32 %v2372_v17, %v2523_v53  ;;  %v2525_v48 = vpop.f32.mrb[45].mxu1  ;;  %v2375_v15 = vpop.f32.mrb[42].mxu0 }
 0x340   :  { %v2526_v3 = vpop.f32.mrb[46].mxu1  ;;  %v2377_v54 = vpop.f32.mrb[43].mxu0 }
 0x341   :  { %v2546_v0 = vmax.f32 %v2232_v24, %v2542_v30  ;;  %v2543_v20 = vmax.f32 %v2375_v15, %v2526_v3  ;;  %v2528_v60 = vpop.f32.mrb[47].mxu1  ;;  %v3916_v24 = vld [vmem:[%s5424_s5 + $0xe0] sm:$0xff]  }
 0x343   :  { %v2557_v63 = vadd.f32 %v3382_v9, %v2546_v0  ;;  %v2547_v5 = vmax.f32 %v2233_v61, %v2543_v20  ;;  %v3922_v61 = vld [vmem:[%s5424_s5 + $0xf8] sm:$0xff]   ;;  %v3463_v20 = vld [vmem:[%s5428_s6] ss:$0 sm:$0xff] }
 0x345   :  { %v2558_v34 = vadd.f32 %v3382_v9, %v2547_v5  ;;  %v2380_v38 = vpop.f32.mrb[44].mxu0  ;;  %v2561_v42 = vmax.f32 %v2557_v63, 0.0 }
 0x346   :  { %v2531_v8 = vpop.f32.mrb[48].mxu1  ;;  %v2382_v47 = vpop.f32.mrb[45].mxu0 }
 0x347   :  { %v2562_v59 = vmax.f32 %v2558_v34, 0.0  ;;  %v2544_v58 = vmax.f32 %v2380_v38, %v2531_v8  ;;  %v2533_v25 = vpop.f32.mrb[49].mxu1  ;;  %v2383_v49 = vpop.f32.mrb[46].mxu0  ;;  %v3464_v47 = vld [vmem:[#allocation2] ss:$0 sm:$0xff] }
 0x348   :  { %v2534_v29 = vpop.f32.mrb[50].mxu1  ;;  %v2385_v32 = vpop.f32.mrb[47].mxu0 }
 0x349   :  { %v2565_v50 = vpack.c.bf16 %v2562_v59, %v2561_v42  ;;  %v2548_v21 = vmax.f32 %v2234_v39, %v2544_v58  ;;  %v2545_v12 = vmax.f32 %v2383_v49, %v2534_v29  ;;  %v2536_v62 = vpop.f32.mrb[51].mxu1  ;;  %v3927_v39 = vld [vmem:[%s5426_s7 + $0x18] sm:$0xff]  }
 0x34b   :  { %v2601_v45 = vrot.slane %v2565_v50, 4  ;;  %v2559_v16 = vadd.f32 %v3382_v9, %v2548_v21  ;;  %v2549_v56 = vmax.f32 %v2235_v46, %v2545_v12  ;;  %3548 = vmatmul.mubr.bf16.vlgmr.msra.gmra.mrb[52].mxu1 %v2565_v50 }
 0x34c   :  { %3572 = vmatpush3.bf16.msra.mxu1 %v3908_v33  ;;  %3587 = vmatprep.mubr.msk.bf16.mxu1 %vm3930_vm5, %v3929_v28 }
 0x34d   :  { %v2560_v14 = vadd.f32 %v3382_v9, %v2549_v56  ;;  %3528 = vmatmul.mubr.bf16.vlgmr.msra.gmra.mrb[48].mxu0 %v2601_v45  ;;  %3573 = vmatprep.subr.bf16.mxu1 %v3929_v28  ;;  %v2563_v18 = vmax.f32 %v2559_v16, 0.0 }
 0x34e   :  { %3552 = vmatpush3.bf16.msra.mxu0 %v3909_v26  ;;  %3567 = vmatprep.mubr.msk.bf16.mxu0 %vm3930_vm5, %v3929_v28 }
 0x34f   :  { %v2564_v52 = vmax.f32 %v2560_v14, 0.0  ;;  %3553 = vmatprep.subr.bf16.mxu0 %v3929_v28 }
 0x350   :  { %3574 = vmatpush3.bf16.msra.mxu1 %v3910_v2 }
 0x351   :  { %v2566_v7 = vpack.c.bf16 %v2564_v52, %v2563_v18  ;;  %3575 = vmatprep.subr.bf16.mxu1 %v3929_v28 }
 0x352   :  { %3554 = vmatpush3.bf16.msra.mxu0 %v3911_v37 }
 0x353   :  { %3555 = vmatprep.subr.bf16.mxu0 %v3929_v28  ;;  %v2903_v57 = vrot.slane %v2566_v7, 4 }
 0x354   :  { %3576 = vmatpush3.bf16.msra.mxu1 %v3912_v55 }
 0x355   :  { %3577 = vmatprep.subr.bf16.mxu1 %v3929_v28 }
 0x356   :  { %3556 = vmatpush3.bf16.msra.mxu0 %v3913_v43 }
 0x357   :  { %3557 = vmatprep.subr.bf16.mxu0 %v3929_v28 }
 0x358   :  { %3578 = vmatpush3.bf16.msra.mxu1 %v3914_v27 }
 0x359   :  { %3579 = vmatprep.subr.bf16.mxu1 %v3929_v28 }
 0x35a   :  { %3558 = vmatpush3.bf16.msra.mxu0 %v3915_v31 }
 0x35b   :  { %3559 = vmatprep.subr.bf16.mxu0 %v3929_v28 }
 0x35c   :  { %3580 = vmatpush3.bf16.msra.mxu1 %v3916_v24 }
 0x35d   :  { %3581 = vmatprep.subr.bf16.mxu1 %v3929_v28 }
 0x35e   :  { %3560 = vmatpush3.bf16.msra.mxu0 %v3917_v13 }
 0x35f   :  { %3561 = vmatprep.subr.bf16.mxu0 %v3929_v28 }
 0x360   :  { %3582 = vmatpush3.bf16.msra.mxu1 %v3918_v10 }
 0x361   :  { %3583 = vmatprep.subr.bf16.mxu1 %v3929_v28 }
 0x362   :  { %3562 = vmatpush3.bf16.msra.mxu0 %v3919_v23 }
 0x363   :  { %3563 = vmatprep.subr.bf16.mxu0 %v3929_v28 }
 0x364   :  { %3584 = vmatpush3.bf16.msra.mxu1 %v3920_v36 }
 0x365   :  { %3585 = vmatprep.subr.bf16.mxu1 %v3929_v28 }
 0x366   :  { %3564 = vmatpush3.bf16.msra.mxu0 %v3921_v40 }
 0x367   :  { %3565 = vmatprep.subr.bf16.mxu0 %v3929_v28 }
 0x368   :  { %3586 = vmatpush3.bf16.msra.mxu1 %v3922_v61 }
 0x36a   :  { %3566 = vmatpush3.bf16.msra.mxu0 %v3923_v19 }
 0x36b   :  { %3588 = vmatmul.mubr.bf16.vlgmr.msra.gmra.mrb[56].mxu1 %v2903_v57  ;;  %3591 = vmatprep.subr.bf16.mxu0 %v3929_v28 }
 0x36d   :  { %3568 = vmatmul.mubr.bf16.vlgmr.msra.gmra.mrb[52].mxu0 %v2566_v7 }
 0x36e   :  { %3599 = vmatprep.mubr.msk.bf16.mxu0 %vm3930_vm5, %v3929_v28  ;;  %3592 = vmatpush3.bf16.msra.mxu0 %v3924_v11 }
 0x36f   :  { %3593 = vmatprep.subr.bf16.mxu0 %v3929_v28 }
 0x372   :  { %3594 = vmatpush3.bf16.msra.mxu0 %v3925_v51 }
 0x373   :  { %3595 = vmatprep.subr.bf16.mxu0 %v3929_v28 }
 0x376   :  { %3596 = vmatpush3.bf16.msra.mxu0 %v3926_v1 }
 0x377   :  { %3597 = vmatprep.subr.bf16.mxu0 %v3929_v28 }
 0x37a   :  { %3598 = vmatpush3.bf16.msra.mxu0 %v3927_v39 }
 0x41e   :  { %v2773_v6 = vpop.f32.mrb[52].mxu1 }
 0x41f   :  { %v3549_v41 = vpop.f32.mrb[53].mxu1 }
 0x420   :  { %v2685_v35 = vpop.f32.mrb[48].mxu0  ;;  %v2776_v46 = vpop.f32.mrb[54].mxu1 }
 0x421   :  { %v2774_v22 = vadd.f32 %v2773_v6, %v2685_v35  ;;  %v3529_v17 = vpop.f32.mrb[49].mxu0  ;;  %v3550_v53 = vpop.f32.mrb[55].mxu1 }
 0x422   :  { %v2688_v44 = vpop.f32.mrb[50].mxu0 }
 0x423   :  { %v3530_v30 = vpop.f32.mrb[51].mxu0 }
 0x43e   :  { %v2987_v28 = vpop.f32.mrb[56].mxu1 }
 0x43f   :  { %v3589_v48 = vpop.f32.mrb[57].mxu1 }
 0x440   :  { %v2878_v15 = vpop.f32.mrb[52].mxu0  ;;  %v2990_v9 = vpop.f32.mrb[58].mxu1 }
 0x441   :  { %v2884_v3 = vadd.f32 %v2878_v15, %v2774_v22  ;;  %v3569_v54 = vpop.f32.mrb[53].mxu0  ;;  %v3590_v0 = vpop.f32.mrb[59].mxu1 }
 0x442   :  { %v2881_v60 = vpop.f32.mrb[54].mxu0 }
 0x443   :  { %v2993_v63 = vadd.f32 %v2987_v28, %v2884_v3  ;;  %v3570_v5 = vpop.f32.mrb[55].mxu0 }
 0x445   :  { %v3001_v34 = vadd.f32 %v3463_v20, %v2993_v63 }
 0x447   :  { %v3002_v38 = vmax.f32 %v3001_v34, 0.0 }
 0x449   :  { %v3003_v8 = vpack.c.bf16 %v3002_v38, %v3002_v38 }
 0x44b   :  { %3600 = vmatmul.mubr.msk.bf16.vlgmr.msra.gmra.mrb[56].mxu0 %vm3043_vm6, %v3003_v8 }
 0x51e   :  { %v3081_v42 = vpop.f32.mrb[56].mxu0 }
 0x51f   :  { %v3082_v59 = vadd.f32 %v3464_v47, %v3081_v42  ;;  %v3601_v58 = vpop.f32.mrb[57].mxu0 }
 0x520   :  { %v3084_v25 = vpop.f32.mrb[58].mxu0 }
 0x521   :  { %3088 = vst.msk [vmem:[%s5429_s9] sm:$0xff] %vm3087_vm7, %v3082_v59  ;;  %v3602_v49 = vpop.f32.mrb[59].mxu0 }

</bundles_post_ra>
